<compile_context>
chip_gen: v7x
topology: tpu7x:2x2x1
jax: 0.10.0
libtpu: 0.0.40
codegen_flags: <defaults>
</compile_context>

<pallas_src>
import math

import jax
import jax.numpy as jnp
from jax.experimental import pallas as pl
from jax.experimental.pallas import tpu as pltpu

# Small-shape stand-ins for the module's 1024/1024 LSTM.
T = 8      # sequence length
TC = 4     # time-chunk size (grid-tiled; bounds VMEM + unroll span)
NT = T // TC
B = 8      # batch
I = 128    # input_size   (module: 1024)
H = 128    # hidden_size  (module: 1024)
assert T % TC == 0

DROP_P = 0.2
_DROP_SCALE = 1.0 / (1.0 - DROP_P)

_ON_TPU = jax.default_backend() == "tpu"


# ----------------------------------------------------------------------------
# Fused bidirectional-LSTM + dropout kernel.
# grid = (2, NT): d=0 -> layer2 (forward), d=1 -> layer1 (time-reversed);
#                 c = time-chunk index (dir 1 walks chunks in reverse order
#                 via the index maps).
# ----------------------------------------------------------------------------
def stage1_kernel(x_ref, wih_ref, whh_ref, b_ref, mask_ref, o_ref,
                  gx_scr, h_scr, c_scr):
    d = pl.program_id(0)

    # Reset the recurrent state at the start of each direction's chunk sweep.
    @pl.when(pl.program_id(1) == 0)
    def _():
        h_scr[...] = jnp.zeros_like(h_scr)
        c_scr[...] = jnp.zeros_like(c_scr)

    # ---- hoisted per-chunk input projection: (TC*B, I) @ (I, 4H) -----------
    x2d = x_ref[...].reshape(TC * B, I)                       # bf16
    gx_scr[...] = (jnp.dot(x2d, wih_ref[0],
                           preferred_element_type=jnp.float32)
                   + b_ref[0]).reshape(TC, B, 4 * H)          # f32 gates_x + b

    whh = whh_ref[0]                                          # (H, 4H) bf16

    # ---- serial recurrence over the chunk (only h @ W_hh left on the MXU) --
    @pl.loop(0, TC, unroll=True)          # unroll span == TC (small), not T
    def _(s):
        # dir 0 consumes within-chunk step s; dir 1 consumes TC-1-s (and its
        # output goes back to that same original time row -> emulated reversal)
        t_in = d * (TC - 1) + (1 - 2 * d) * s

        gates = gx_scr[t_in] + jnp.dot(h_scr[...].astype(jnp.bfloat16), whh,
                                       preferred_element_type=jnp.float32)
        # gate order [i, f, o | g]: one wide sigmoid + one tanh per step
        sig = jax.nn.sigmoid(gates[:, :3 * H])
        i_g = sig[:, 0 * H:1 * H]
        f_g = sig[:, 1 * H:2 * H]
        o_g = sig[:, 2 * H:3 * H]
        g_g = jnp.tanh(gates[:, 3 * H:4 * H])

        c_new = f_g * c_scr[...] + i_g * g_g
        h_new = o_g * jnp.tanh(c_new)
        c_scr[...] = c_new
        h_scr[...] = h_new

        # Fused inverted dropout on the output store (mask is 0 or 1/(1-p)).
        o_ref[t_in] = h_new * mask_ref[0, t_in]


def _chunk_idx(d, c):
    # dir 1 visits the time chunks in reverse order
    return d * (NT - 1) + (1 - 2 * d) * c


def _weight_spec(shape):
    """Direction-indexed weight block.  Single-buffered on TPU: weights only
    change at the single direction boundary, so Buffered(1) frees half the
    weight VMEM (matters at 1024/1024 on v7x) for one exposed DMA."""
    kwargs = {}
    if _ON_TPU and hasattr(pl, "Buffered"):
        kwargs["pipeline_mode"] = pl.Buffered(1)
    return pl.BlockSpec(shape, lambda d, c: (d, 0, 0), **kwargs)


def stage1_bidir_lstm_dropout(x_bf, wih_t, whh_t, bias, mask):
    """x_bf: (T,B,I) bf16; wih_t: (2,I,4H) bf16; whh_t: (2,H,4H) bf16;
    bias: (2,1,4H) f32; mask: (2,T,B,H) f32 (0 or 1/(1-p)).
    Returns (T, B, 2H) f32."""
    return pl.pallas_call(
        stage1_kernel,
        out_shape=jax.ShapeDtypeStruct((T, B, 2 * H), jnp.float32),
        grid_spec=pltpu.PrefetchScalarGridSpec(
            num_scalar_prefetch=0,
            grid=(2, NT),
            in_specs=[
                pl.BlockSpec((TC, B, I), lambda d, c: (_chunk_idx(d, c), 0, 0)),
                _weight_spec((1, I, 4 * H)),
                _weight_spec((1, H, 4 * H)),
                pl.BlockSpec((1, 1, 4 * H), lambda d, c: (d, 0, 0)),
                pl.BlockSpec((1, TC, B, H),
                             lambda d, c: (d, _chunk_idx(d, c), 0, 0)),
            ],
            out_specs=pl.BlockSpec((TC, B, H),
                                   lambda d, c: (_chunk_idx(d, c), 0, d)),
            scratch_shapes=[
                pltpu.VMEM((TC, B, 4 * H), jnp.float32),   # per-chunk gates_x
                pltpu.VMEM((B, H), jnp.float32),           # h state (persists)
                pltpu.VMEM((B, H), jnp.float32),           # c state (persists)
            ],
        ),
        compiler_params=pltpu.CompilerParams(
            # v7x: one direction per TensorCore; chunk axis is the recurrence.
            dimension_semantics=("parallel", "arbitrary"),
            # sized for real-scale weights + chunk buffers (< ~56 MiB on v7x)
            vmem_limit_bytes=48 * 1024 * 1024,
        ),
    )(x_bf, wih_t, whh_t, bias, mask)


# ----------------------------------------------------------------------------
# Stage1 forward
# ----------------------------------------------------------------------------
@jax.jit
def stage1_forward(input1, input0, params, dropout_key):
    # forward(input1, input0): out0 = input0.clone(); out1 = input1.clone()
    del input1   # lengths: unused by the emulated-bidirectional training path
    x_bf = input0.astype(jnp.bfloat16)           # cast once in XLA (halves DMA)
    # Dropout keep-mask generated outside the kernel (pltpu.prng_* has no
    # CPU/interpret lowering); streamed per direction / per time-chunk.
    keep = jax.random.bernoulli(dropout_key, 1.0 - DROP_P, (2, T, B, H))
    mask = keep.astype(jnp.float32) * _DROP_SCALE
    return stage1_bidir_lstm_dropout(x_bf, params["wih_t"], params["whh_t"],
                                     params["bias"], mask)


def init_params(key):
    """Deterministic init mimicking nn.LSTM's U(-1/sqrt(H), 1/sqrt(H)).

    Index 0 = layer2 weights (forward dir), index 1 = layer1 weights
    (backward dir), matching EmuBidirLSTM(layer2, layer1, ...).
    Gate column order is [i, f, o, g] (kernel + reference agree).
    Weights stored bf16 (MXU operands); bias stays f32."""
    bound = 1.0 / math.sqrt(H)
    ks = jax.random.split(key, 8)

    def u(k, shape):
        return jax.random.uniform(k, shape, jnp.float32, -bound, bound)

    wih = jnp.stack([u(ks[0], (4 * H, I)), u(ks[1], (4 * H, I))])   # (2,4H,I)
    whh = jnp.stack([u(ks[2], (4 * H, H)), u(ks[3], (4 * H, H))])   # (2,4H,H)
    b_ih = jnp.stack([u(ks[4], (4 * H,)), u(ks[5], (4 * H,))])
    b_hh = jnp.stack([u(ks[6], (4 * H,)), u(ks[7], (4 * H,))])
    return {
        "wih_t": jnp.transpose(wih, (0, 2, 1)).astype(jnp.bfloat16),  # (2,I,4H)
        "whh_t": jnp.transpose(whh, (0, 2, 1)).astype(jnp.bfloat16),  # (2,H,4H)
        "bias": (b_ih + b_hh).reshape(2, 1, 4 * H),                   # f32
    }


# ----------------------------------------------------------------------------
# Pure-JAX reference for the (pre-dropout) bidirectional LSTM, using the same
# bf16-operand / f32-accumulate matmul semantics and [i,f,o,g] gate order.
# ----------------------------------------------------------------------------
def lstm_ref_dir(x, wih_bf, whh_bf, b, reverse):
    xs = x[::-1] if reverse else x
    xs = xs.astype(jnp.bfloat16)

    def step(carry, xt):
        h, c = carry
        g = (jnp.dot(xt, wih_bf, preferred_element_type=jnp.float32) + b
             + jnp.dot(h.astype(jnp.bfloat16), whh_bf,
                       preferred_element_type=jnp.float32))
        i_g = jax.nn.sigmoid(g[:, 0 * H:1 * H])
        f_g = jax.nn.sigmoid(g[:, 1 * H:2 * H])
        o_g = jax.nn.sigmoid(g[:, 2 * H:3 * H])
        g_g = jnp.tanh(g[:, 3 * H:4 * H])
        c = f_g * c + i_g * g_g
        h = o_g * jnp.tanh(c)
        return (h, c), h

    init = (jnp.zeros((B, H), jnp.float32), jnp.zeros((B, H), jnp.float32))
    _, ys = jax.lax.scan(step, init, xs)
    return ys[::-1] if reverse else ys


def bidir_ref(x, params):
    fwd = lstm_ref_dir(x, params["wih_t"][0], params["whh_t"][0],
                       params["bias"][0], reverse=False)
    bwd = lstm_ref_dir(x, params["wih_t"][1], params["whh_t"][1],
                       params["bias"][1], reverse=True)
    return jnp.concatenate([fwd, bwd], axis=-1)          # (T, B, 2H)


if __name__ == "__main__":
    key = jax.random.PRNGKey(0)
    k_x, k_p, k_drop = jax.random.split(key, 3)

    input0 = jax.random.normal(k_x, (T, B, I), jnp.float32)   # (seq, batch, feat)
    input1 = jnp.full((B,), T, dtype=jnp.int32)               # lengths (unused)
    params = init_params(k_p)

    out = stage1_forward(input1, input0, params, k_drop)
    jax.block_until_ready(out)
    assert out.shape == (T, B, 2 * H) and out.dtype == jnp.float32

    # Sanity check against the pure-JAX LSTM reference: every kept (non-zero)
    # element must equal ref * 1/(1-p); the dropped fraction must be ~p.
    ref = bidir_ref(input0, params)
    kept = out != 0.0
    err = float(jnp.max(jnp.where(kept, jnp.abs(out - ref * _DROP_SCALE), 0.0)))
    assert err < 5e-3, f"LSTM/dropout mismatch on kept elements: {err}"
    drop_frac = float(jnp.mean((~kept).astype(jnp.float32)))
    assert 0.1 < drop_frac < 0.3, f"unexpected dropout rate: {drop_frac}"

    print("KERNEL_OK")
</pallas_src>

<mosaic_0001>
module attributes {stable_mosaic.version = 11 : i64} {
  func.func @stage1_kernel(%arg0: i32, %arg1: i32, %arg2: memref<4x8x128xbf16, #tpu.memory_space<vmem>>, %arg3: memref<1x128x512xbf16, #tpu.memory_space<vmem>>, %arg4: memref<1x128x512xbf16, #tpu.memory_space<vmem>>, %arg5: memref<1x1x512xf32, #tpu.memory_space<vmem>>, %arg6: memref<1x4x8x128xf32, #tpu.memory_space<vmem>>, %arg7: memref<4x8x128xf32, #tpu.memory_space<vmem>>, %arg8: memref<4x8x512xf32, #tpu.memory_space<vmem>>, %arg9: memref<8x128xf32, #tpu.memory_space<vmem>>, %arg10: memref<8x128xf32, #tpu.memory_space<vmem>>) attributes {dimension_semantics = [#tpu.dimension_semantics<parallel>, #tpu.dimension_semantics<arbitrary>], iteration_bounds = array<i64: 2, 2>, scalar_prefetch = 0 : i64, scratch_operands = 3 : i64, tpu.core_type = #tpu.core_type<tc>, window_params = [{transform_indices = @transform_0, window_bounds = array<i64: 4, 8, 128>}, {transform_indices = @transform_1, window_bounds = array<i64: 1, 128, 512>}, {transform_indices = @transform_2, window_bounds = array<i64: 1, 128, 512>}, {transform_indices = @transform_3, window_bounds = array<i64: 1, 1, 512>}, {transform_indices = @transform_4, window_bounds = array<i64: 1, 4, 8, 128>}, {transform_indices = @transform_5, window_bounds = array<i64: 4, 8, 128>}]} {
    %c0_i32 = arith.constant 0 : i32
    %0 = arith.cmpi eq, %arg1, %c0_i32 : i32
    %1 = arith.extui %0 : i1 to i32
    %c0_i32_0 = arith.constant 0 : i32
    %2 = arith.cmpi ne, %1, %c0_i32_0 : i32
    scf.if %2 {
      %cst_104 = arith.constant 0.000000e+00 : f32
      %180 = vector.broadcast %cst_104 : f32 to vector<8x128xf32>
      %c0_105 = arith.constant 0 : index
      %c0_106 = arith.constant 0 : index
      %181 = vector.load %arg9[%c0_105, %c0_106] : memref<8x128xf32, #tpu.memory_space<vmem>>, vector<8x128xf32>
      tpu.vector_store %arg9[%c0_105, %c0_106], %180 {strides = array<i32>} : memref<8x128xf32, #tpu.memory_space<vmem>>, vector<8x128xf32>,
      %cst_107 = arith.constant 0.000000e+00 : f32
      %182 = vector.broadcast %cst_107 : f32 to vector<8x128xf32>
      %c0_108 = arith.constant 0 : index
      %c0_109 = arith.constant 0 : index
      %183 = vector.load %arg10[%c0_108, %c0_109] : memref<8x128xf32, #tpu.memory_space<vmem>>, vector<8x128xf32>
      tpu.vector_store %arg10[%c0_108, %c0_109], %182 {strides = array<i32>} : memref<8x128xf32, #tpu.memory_space<vmem>>, vector<8x128xf32>,
    } else {
    }
    %c0 = arith.constant 0 : index
    %c0_1 = arith.constant 0 : index
    %c0_2 = arith.constant 0 : index
    %3 = vector.load %arg2[%c0, %c0_1, %c0_2] : memref<4x8x128xbf16, #tpu.memory_space<vmem>>, vector<4x8x128xbf16>
    %4 = vector.shape_cast %3 : vector<4x8x128xbf16> to vector<32x128xbf16>
    %c0_3 = arith.constant 0 : index
    %c0_4 = arith.constant 0 : index
    %c0_5 = arith.constant 0 : index
    %5 = vector.load %arg3[%c0_3, %c0_4, %c0_5] : memref<1x128x512xbf16, #tpu.memory_space<vmem>>, vector<1x128x512xbf16>
    %6 = vector.shape_cast %5 : vector<1x128x512xbf16> to vector<128x512xbf16>
    %cst = arith.constant dense<0.000000e+00> : vector<32x512xf32>
    %7 = tpu.matmul %4, %6, %cst {dimension_numbers = #tpu.dot_dimension_numbers<[1], [0], [0], [1], [0, 0, 1, 1], [], []>} : vector<32x128xbf16>, vector<128x512xbf16>, vector<32x512xf32> -> vector<32x512xf32>
    %c0_6 = arith.constant 0 : index
    %c0_7 = arith.constant 0 : index
    %c0_8 = arith.constant 0 : index
    %8 = vector.load %arg5[%c0_6, %c0_7, %c0_8] : memref<1x1x512xf32, #tpu.memory_space<vmem>>, vector<1x1x512xf32>
    %9 = vector.shape_cast %8 : vector<1x1x512xf32> to vector<1x512xf32>
    %10 = vector.broadcast %9 : vector<1x512xf32> to vector<32x512xf32>
    %11 = arith.addf %7, %10 : vector<32x512xf32>
    %12 = vector.shape_cast %11 : vector<32x512xf32> to vector<4x8x512xf32>
    %c0_9 = arith.constant 0 : index
    %c0_10 = arith.constant 0 : index
    %c0_11 = arith.constant 0 : index
    %13 = vector.load %arg8[%c0_9, %c0_10, %c0_11] : memref<4x8x512xf32, #tpu.memory_space<vmem>>, vector<4x8x512xf32>
    tpu.vector_store %arg8[%c0_9, %c0_10, %c0_11], %12 {strides = array<i32>} : memref<4x8x512xf32, #tpu.memory_space<vmem>>, vector<4x8x512xf32>,
    %c0_12 = arith.constant 0 : index
    %c0_13 = arith.constant 0 : index
    %c0_14 = arith.constant 0 : index
    %14 = vector.load %arg4[%c0_12, %c0_13, %c0_14] : memref<1x128x512xbf16, #tpu.memory_space<vmem>>, vector<1x128x512xbf16>
    %15 = vector.shape_cast %14 : vector<1x128x512xbf16> to vector<128x512xbf16>
    %c0_i32_15 = arith.constant 0 : i32
    %c1_i32 = arith.constant 1 : i32
    %16 = arith.muli %c0_i32_15, %c1_i32 : i32
    %c0_i32_16 = arith.constant 0 : i32
    %17 = arith.addi %c0_i32_16, %16 : i32
    %c3_i32 = arith.constant 3 : i32
    %18 = arith.muli %arg0, %c3_i32 : i32
    %c2_i32 = arith.constant 2 : i32
    %19 = arith.muli %c2_i32, %arg0 : i32
    %c1_i32_17 = arith.constant 1 : i32
    %20 = arith.subi %c1_i32_17, %19 : i32
    %21 = arith.muli %20, %17 : i32
    %22 = arith.addi %18, %21 : i32
    %23 = arith.index_cast %22 : i32 to index
    %c0_18 = arith.constant 0 : index
    %c0_19 = arith.constant 0 : index
    %24 = vector.load %arg8[%23, %c0_18, %c0_19] : memref<4x8x512xf32, #tpu.memory_space<vmem>>, vector<1x8x512xf32>
    %25 = vector.shape_cast %24 : vector<1x8x512xf32> to vector<8x512xf32>
    %c0_20 = arith.constant 0 : index
    %c0_21 = arith.constant 0 : index
    %26 = vector.load %arg9[%c0_20, %c0_21] : memref<8x128xf32, #tpu.memory_space<vmem>>, vector<8x128xf32>
    %27 = arith.truncf %26 : vector<8x128xf32> to vector<8x128xbf16>
    %cst_22 = arith.constant dense<0.000000e+00> : vector<8x512xf32>
    %28 = tpu.matmul %27, %15, %cst_22 {dimension_numbers = #tpu.dot_dimension_numbers<[1], [0], [0], [1], [0, 0, 1, 1], [], []>} : vector<8x128xbf16>, vector<128x512xbf16>, vector<8x512xf32> -> vector<8x512xf32>
    %29 = arith.addf %25, %28 : vector<8x512xf32>
    %30 = vector.extract_strided_slice %29 {offsets = [0, 0], sizes = [8, 384], strides = [1, 1]} : vector<8x512xf32> to vector<8x384xf32>
    %31 = arith.negf %30 : vector<8x384xf32>
    %32 = math.exp %31 : vector<8x384xf32>
    %cst_23 = arith.constant 1.000000e+00 : f32
    %33 = vector.broadcast %cst_23 : f32 to vector<8x384xf32>
    %34 = arith.addf %33, %32 : vector<8x384xf32>
    %35 = arith.divf %33, %34 : vector<8x384xf32>
    %36 = vector.extract_strided_slice %35 {offsets = [0, 0], sizes = [8, 128], strides = [1, 1]} : vector<8x384xf32> to vector<8x128xf32>
    %37 = vector.extract_strided_slice %35 {offsets = [0, 128], sizes = [8, 128], strides = [1, 1]} : vector<8x384xf32> to vector<8x128xf32>
    %38 = vector.extract_strided_slice %35 {offsets = [0, 256], sizes = [8, 128], strides = [1, 1]} : vector<8x384xf32> to vector<8x128xf32>
    %39 = vector.extract_strided_slice %29 {offsets = [0, 384], sizes = [8, 128], strides = [1, 1]} : vector<8x512xf32> to vector<8x128xf32>
    %40 = math.tanh %39 : vector<8x128xf32>
    %c0_24 = arith.constant 0 : index
    %c0_25 = arith.constant 0 : index
    %41 = vector.load %arg10[%c0_24, %c0_25] : memref<8x128xf32, #tpu.memory_space<vmem>>, vector<8x128xf32>
    %42 = arith.mulf %37, %41 : vector<8x128xf32>
    %43 = arith.mulf %36, %40 : vector<8x128xf32>
    %44 = arith.addf %42, %43 : vector<8x128xf32>
    %45 = math.tanh %44 : vector<8x128xf32>
    %46 = arith.mulf %38, %45 : vector<8x128xf32>
    %c0_26 = arith.constant 0 : index
    %c0_27 = arith.constant 0 : index
    %47 = vector.load %arg10[%c0_26, %c0_27] : memref<8x128xf32, #tpu.memory_space<vmem>>, vector<8x128xf32>
    tpu.vector_store %arg10[%c0_26, %c0_27], %44 {strides = array<i32>} : memref<8x128xf32, #tpu.memory_space<vmem>>, vector<8x128xf32>,
    %c0_28 = arith.constant 0 : index
    %c0_29 = arith.constant 0 : index
    %48 = vector.load %arg9[%c0_28, %c0_29] : memref<8x128xf32, #tpu.memory_space<vmem>>, vector<8x128xf32>
    tpu.vector_store %arg9[%c0_28, %c0_29], %46 {strides = array<i32>} : memref<8x128xf32, #tpu.memory_space<vmem>>, vector<8x128xf32>,
    %c0_30 = arith.constant 0 : index
    %49 = arith.index_cast %22 : i32 to index
    %c0_31 = arith.constant 0 : index
    %c0_32 = arith.constant 0 : index
    %50 = vector.load %arg6[%c0_30, %49, %c0_31, %c0_32] : memref<1x4x8x128xf32, #tpu.memory_space<vmem>>, vector<1x1x8x128xf32>
    %51 = vector.shape_cast %50 : vector<1x1x8x128xf32> to vector<8x128xf32>
    %52 = arith.mulf %46, %51 : vector<8x128xf32>
    %53 = arith.index_cast %22 : i32 to index
    %c0_33 = arith.constant 0 : index
    %c0_34 = arith.constant 0 : index
    %54 = vector.load %arg7[%53, %c0_33, %c0_34] : memref<4x8x128xf32, #tpu.memory_space<vmem>>, vector<1x8x128xf32>
    %55 = vector.shape_cast %54 : vector<1x8x128xf32> to vector<8x128xf32>
    %56 = vector.shape_cast %52 : vector<8x128xf32> to vector<1x8x128xf32>
    tpu.vector_store %arg7[%53, %c0_33, %c0_34], %56 {strides = array<i32>} : memref<4x8x128xf32, #tpu.memory_space<vmem>>, vector<1x8x128xf32>,
    %c1_i32_35 = arith.constant 1 : i32
    %c1_i32_36 = arith.constant 1 : i32
    %57 = arith.muli %c1_i32_35, %c1_i32_36 : i32
    %c0_i32_37 = arith.constant 0 : i32
    %58 = arith.addi %c0_i32_37, %57 : i32
    %c3_i32_38 = arith.constant 3 : i32
    %59 = arith.muli %arg0, %c3_i32_38 : i32
    %c2_i32_39 = arith.constant 2 : i32
    %60 = arith.muli %c2_i32_39, %arg0 : i32
    %c1_i32_40 = arith.constant 1 : i32
    %61 = arith.subi %c1_i32_40, %60 : i32
    %62 = arith.muli %61, %58 : i32
    %63 = arith.addi %59, %62 : i32
    %64 = arith.index_cast %63 : i32 to index
    %c0_41 = arith.constant 0 : index
    %c0_42 = arith.constant 0 : index
    %65 = vector.load %arg8[%64, %c0_41, %c0_42] : memref<4x8x512xf32, #tpu.memory_space<vmem>>, vector<1x8x512xf32>
    %66 = vector.shape_cast %65 : vector<1x8x512xf32> to vector<8x512xf32>
    %c0_43 = arith.constant 0 : index
    %c0_44 = arith.constant 0 : index
    %67 = vector.load %arg9[%c0_43, %c0_44] : memref<8x128xf32, #tpu.memory_space<vmem>>, vector<8x128xf32>
    %68 = arith.truncf %67 : vector<8x128xf32> to vector<8x128xbf16>
    %cst_45 = arith.constant dense<0.000000e+00> : vector<8x512xf32>
    %69 = tpu.matmul %68, %15, %cst_45 {dimension_numbers = #tpu.dot_dimension_numbers<[1], [0], [0], [1], [0, 0, 1, 1], [], []>} : vector<8x128xbf16>, vector<128x512xbf16>, vector<8x512xf32> -> vector<8x512xf32>
    %70 = arith.addf %66, %69 : vector<8x512xf32>
    %71 = vector.extract_strided_slice %70 {offsets = [0, 0], sizes = [8, 384], strides = [1, 1]} : vector<8x512xf32> to vector<8x384xf32>
    %72 = arith.negf %71 : vector<8x384xf32>
    %73 = math.exp %72 : vector<8x384xf32>
    %cst_46 = arith.constant 1.000000e+00 : f32
    %74 = vector.broadcast %cst_46 : f32 to vector<8x384xf32>
    %75 = arith.addf %74, %73 : vector<8x384xf32>
    %76 = arith.divf %74, %75 : vector<8x384xf32>
    %77 = vector.extract_strided_slice %76 {offsets = [0, 0], sizes = [8, 128], strides = [1, 1]} : vector<8x384xf32> to vector<8x128xf32>
    %78 = vector.extract_strided_slice %76 {offsets = [0, 128], sizes = [8, 128], strides = [1, 1]} : vector<8x384xf32> to vector<8x128xf32>
    %79 = vector.extract_strided_slice %76 {offsets = [0, 256], sizes = [8, 128], strides = [1, 1]} : vector<8x384xf32> to vector<8x128xf32>
    %80 = vector.extract_strided_slice %70 {offsets = [0, 384], sizes = [8, 128], strides = [1, 1]} : vector<8x512xf32> to vector<8x128xf32>
    %81 = math.tanh %80 : vector<8x128xf32>
    %c0_47 = arith.constant 0 : index
    %c0_48 = arith.constant 0 : index
    %82 = vector.load %arg10[%c0_47, %c0_48] : memref<8x128xf32, #tpu.memory_space<vmem>>, vector<8x128xf32>
    %83 = arith.mulf %78, %82 : vector<8x128xf32>
    %84 = arith.mulf %77, %81 : vector<8x128xf32>
    %85 = arith.addf %83, %84 : vector<8x128xf32>
    %86 = math.tanh %85 : vector<8x128xf32>
    %87 = arith.mulf %79, %86 : vector<8x128xf32>
    %c0_49 = arith.constant 0 : index
    %c0_50 = arith.constant 0 : index
    %88 = vector.load %arg10[%c0_49, %c0_50] : memref<8x128xf32, #tpu.memory_space<vmem>>, vector<8x128xf32>
    tpu.vector_store %arg10[%c0_49, %c0_50], %85 {strides = array<i32>} : memref<8x128xf32, #tpu.memory_space<vmem>>, vector<8x128xf32>,
    %c0_51 = arith.constant 0 : index
    %c0_52 = arith.constant 0 : index
    %89 = vector.load %arg9[%c0_51, %c0_52] : memref<8x128xf32, #tpu.memory_space<vmem>>, vector<8x128xf32>
    tpu.vector_store %arg9[%c0_51, %c0_52], %87 {strides = array<i32>} : memref<8x128xf32, #tpu.memory_space<vmem>>, vector<8x128xf32>,
    %c0_53 = arith.constant 0 : index
    %90 = arith.index_cast %63 : i32 to index
    %c0_54 = arith.constant 0 : index
    %c0_55 = arith.constant 0 : index
    %91 = vector.load %arg6[%c0_53, %90, %c0_54, %c0_55] : memref<1x4x8x128xf32, #tpu.memory_space<vmem>>, vector<1x1x8x128xf32>
    %92 = vector.shape_cast %91 : vector<1x1x8x128xf32> to vector<8x128xf32>
    %93 = arith.mulf %87, %92 : vector<8x128xf32>
    %94 = arith.index_cast %63 : i32 to index
    %c0_56 = arith.constant 0 : index
    %c0_57 = arith.constant 0 : index
    %95 = vector.load %arg7[%94, %c0_56, %c0_57] : memref<4x8x128xf32, #tpu.memory_space<vmem>>, vector<1x8x128xf32>
    %96 = vector.shape_cast %95 : vector<1x8x128xf32> to vector<8x128xf32>
    %97 = vector.shape_cast %93 : vector<8x128xf32> to vector<1x8x128xf32>
    tpu.vector_store %arg7[%94, %c0_56, %c0_57], %97 {strides = array<i32>} : memref<4x8x128xf32, #tpu.memory_space<vmem>>, vector<1x8x128xf32>,
    %c2_i32_58 = arith.constant 2 : i32
    %c1_i32_59 = arith.constant 1 : i32
    %98 = arith.muli %c2_i32_58, %c1_i32_59 : i32
    %c0_i32_60 = arith.constant 0 : i32
    %99 = arith.addi %c0_i32_60, %98 : i32
    %c3_i32_61 = arith.constant 3 : i32
    %100 = arith.muli %arg0, %c3_i32_61 : i32
    %c2_i32_62 = arith.constant 2 : i32
    %101 = arith.muli %c2_i32_62, %arg0 : i32
    %c1_i32_63 = arith.constant 1 : i32
    %102 = arith.subi %c1_i32_63, %101 : i32
    %103 = arith.muli %102, %99 : i32
    %104 = arith.addi %100, %103 : i32
    %105 = arith.index_cast %104 : i32 to index
    %c0_64 = arith.constant 0 : index
    %c0_65 = arith.constant 0 : index
    %106 = vector.load %arg8[%105, %c0_64, %c0_65] : memref<4x8x512xf32, #tpu.memory_space<vmem>>, vector<1x8x512xf32>
    %107 = vector.shape_cast %106 : vector<1x8x512xf32> to vector<8x512xf32>
    %c0_66 = arith.constant 0 : index
    %c0_67 = arith.constant 0 : index
    %108 = vector.load %arg9[%c0_66, %c0_67] : memref<8x128xf32, #tpu.memory_space<vmem>>, vector<8x128xf32>
    %109 = arith.truncf %108 : vector<8x128xf32> to vector<8x128xbf16>
    %cst_68 = arith.constant dense<0.000000e+00> : vector<8x512xf32>
    %110 = tpu.matmul %109, %15, %cst_68 {dimension_numbers = #tpu.dot_dimension_numbers<[1], [0], [0], [1], [0, 0, 1, 1], [], []>} : vector<8x128xbf16>, vector<128x512xbf16>, vector<8x512xf32> -> vector<8x512xf32>
    %111 = arith.addf %107, %110 : vector<8x512xf32>
    %112 = vector.extract_strided_slice %111 {offsets = [0, 0], sizes = [8, 384], strides = [1, 1]} : vector<8x512xf32> to vector<8x384xf32>
    %113 = arith.negf %112 : vector<8x384xf32>
    %114 = math.exp %113 : vector<8x384xf32>
    %cst_69 = arith.constant 1.000000e+00 : f32
    %115 = vector.broadcast %cst_69 : f32 to vector<8x384xf32>
    %116 = arith.addf %115, %114 : vector<8x384xf32>
    %117 = arith.divf %115, %116 : vector<8x384xf32>
    %118 = vector.extract_strided_slice %117 {offsets = [0, 0], sizes = [8, 128], strides = [1, 1]} : vector<8x384xf32> to vector<8x128xf32>
    %119 = vector.extract_strided_slice %117 {offsets = [0, 128], sizes = [8, 128], strides = [1, 1]} : vector<8x384xf32> to vector<8x128xf32>
    %120 = vector.extract_strided_slice %117 {offsets = [0, 256], sizes = [8, 128], strides = [1, 1]} : vector<8x384xf32> to vector<8x128xf32>
    %121 = vector.extract_strided_slice %111 {offsets = [0, 384], sizes = [8, 128], strides = [1, 1]} : vector<8x512xf32> to vector<8x128xf32>
    %122 = math.tanh %121 : vector<8x128xf32>
    %c0_70 = arith.constant 0 : index
    %c0_71 = arith.constant 0 : index
    %123 = vector.load %arg10[%c0_70, %c0_71] : memref<8x128xf32, #tpu.memory_space<vmem>>, vector<8x128xf32>
    %124 = arith.mulf %119, %123 : vector<8x128xf32>
    %125 = arith.mulf %118, %122 : vector<8x128xf32>
    %126 = arith.addf %124, %125 : vector<8x128xf32>
    %127 = math.tanh %126 : vector<8x128xf32>
    %128 = arith.mulf %120, %127 : vector<8x128xf32>
    %c0_72 = arith.constant 0 : index
    %c0_73 = arith.constant 0 : index
    %129 = vector.load %arg10[%c0_72, %c0_73] : memref<8x128xf32, #tpu.memory_space<vmem>>, vector<8x128xf32>
    tpu.vector_store %arg10[%c0_72, %c0_73], %126 {strides = array<i32>} : memref<8x128xf32, #tpu.memory_space<vmem>>, vector<8x128xf32>,
    %c0_74 = arith.constant 0 : index
    %c0_75 = arith.constant 0 : index
    %130 = vector.load %arg9[%c0_74, %c0_75] : memref<8x128xf32, #tpu.memory_space<vmem>>, vector<8x128xf32>
    tpu.vector_store %arg9[%c0_74, %c0_75], %128 {strides = array<i32>} : memref<8x128xf32, #tpu.memory_space<vmem>>, vector<8x128xf32>,
    %c0_76 = arith.constant 0 : index
    %131 = arith.index_cast %104 : i32 to index
    %c0_77 = arith.constant 0 : index
    %c0_78 = arith.constant 0 : index
    %132 = vector.load %arg6[%c0_76, %131, %c0_77, %c0_78] : memref<1x4x8x128xf32, #tpu.memory_space<vmem>>, vector<1x1x8x128xf32>
    %133 = vector.shape_cast %132 : vector<1x1x8x128xf32> to vector<8x128xf32>
    %134 = arith.mulf %128, %133 : vector<8x128xf32>
    %135 = arith.index_cast %104 : i32 to index
    %c0_79 = arith.constant 0 : index
    %c0_80 = arith.constant 0 : index
    %136 = vector.load %arg7[%135, %c0_79, %c0_80] : memref<4x8x128xf32, #tpu.memory_space<vmem>>, vector<1x8x128xf32>
    %137 = vector.shape_cast %136 : vector<1x8x128xf32> to vector<8x128xf32>
    %138 = vector.shape_cast %134 : vector<8x128xf32> to vector<1x8x128xf32>
    tpu.vector_store %arg7[%135, %c0_79, %c0_80], %138 {strides = array<i32>} : memref<4x8x128xf32, #tpu.memory_space<vmem>>, vector<1x8x128xf32>,
    %c3_i32_81 = arith.constant 3 : i32
    %c1_i32_82 = arith.constant 1 : i32
    %139 = arith.muli %c3_i32_81, %c1_i32_82 : i32
    %c0_i32_83 = arith.constant 0 : i32
    %140 = arith.addi %c0_i32_83, %139 : i32
    %c3_i32_84 = arith.constant 3 : i32
    %141 = arith.muli %arg0, %c3_i32_84 : i32
    %c2_i32_85 = arith.constant 2 : i32
    %142 = arith.muli %c2_i32_85, %arg0 : i32
    %c1_i32_86 = arith.constant 1 : i32
    %143 = arith.subi %c1_i32_86, %142 : i32
    %144 = arith.muli %143, %140 : i32
    %145 = arith.addi %141, %144 : i32
    %146 = arith.index_cast %145 : i32 to index
    %c0_87 = arith.constant 0 : index
    %c0_88 = arith.constant 0 : index
    %147 = vector.load %arg8[%146, %c0_87, %c0_88] : memref<4x8x512xf32, #tpu.memory_space<vmem>>, vector<1x8x512xf32>
    %148 = vector.shape_cast %147 : vector<1x8x512xf32> to vector<8x512xf32>
    %c0_89 = arith.constant 0 : index
    %c0_90 = arith.constant 0 : index
    %149 = vector.load %arg9[%c0_89, %c0_90] : memref<8x128xf32, #tpu.memory_space<vmem>>, vector<8x128xf32>
    %150 = arith.truncf %149 : vector<8x128xf32> to vector<8x128xbf16>
    %cst_91 = arith.constant dense<0.000000e+00> : vector<8x512xf32>
    %151 = tpu.matmul %150, %15, %cst_91 {dimension_numbers = #tpu.dot_dimension_numbers<[1], [0], [0], [1], [0, 0, 1, 1], [], []>} : vector<8x128xbf16>, vector<128x512xbf16>, vector<8x512xf32> -> vector<8x512xf32>
    %152 = arith.addf %148, %151 : vector<8x512xf32>
    %153 = vector.extract_strided_slice %152 {offsets = [0, 0], sizes = [8, 384], strides = [1, 1]} : vector<8x512xf32> to vector<8x384xf32>
    %154 = arith.negf %153 : vector<8x384xf32>
    %155 = math.exp %154 : vector<8x384xf32>
    %cst_92 = arith.constant 1.000000e+00 : f32
    %156 = vector.broadcast %cst_92 : f32 to vector<8x384xf32>
    %157 = arith.addf %156, %155 : vector<8x384xf32>
    %158 = arith.divf %156, %157 : vector<8x384xf32>
    %159 = vector.extract_strided_slice %158 {offsets = [0, 0], sizes = [8, 128], strides = [1, 1]} : vector<8x384xf32> to vector<8x128xf32>
    %160 = vector.extract_strided_slice %158 {offsets = [0, 128], sizes = [8, 128], strides = [1, 1]} : vector<8x384xf32> to vector<8x128xf32>
    %161 = vector.extract_strided_slice %158 {offsets = [0, 256], sizes = [8, 128], strides = [1, 1]} : vector<8x384xf32> to vector<8x128xf32>
    %162 = vector.extract_strided_slice %152 {offsets = [0, 384], sizes = [8, 128], strides = [1, 1]} : vector<8x512xf32> to vector<8x128xf32>
    %163 = math.tanh %162 : vector<8x128xf32>
    %c0_93 = arith.constant 0 : index
    %c0_94 = arith.constant 0 : index
    %164 = vector.load %arg10[%c0_93, %c0_94] : memref<8x128xf32, #tpu.memory_space<vmem>>, vector<8x128xf32>
    %165 = arith.mulf %160, %164 : vector<8x128xf32>
    %166 = arith.mulf %159, %163 : vector<8x128xf32>
    %167 = arith.addf %165, %166 : vector<8x128xf32>
    %168 = math.tanh %167 : vector<8x128xf32>
    %169 = arith.mulf %161, %168 : vector<8x128xf32>
    %c0_95 = arith.constant 0 : index
    %c0_96 = arith.constant 0 : index
    %170 = vector.load %arg10[%c0_95, %c0_96] : memref<8x128xf32, #tpu.memory_space<vmem>>, vector<8x128xf32>
    tpu.vector_store %arg10[%c0_95, %c0_96], %167 {strides = array<i32>} : memref<8x128xf32, #tpu.memory_space<vmem>>, vector<8x128xf32>,
    %c0_97 = arith.constant 0 : index
    %c0_98 = arith.constant 0 : index
    %171 = vector.load %arg9[%c0_97, %c0_98] : memref<8x128xf32, #tpu.memory_space<vmem>>, vector<8x128xf32>
    tpu.vector_store %arg9[%c0_97, %c0_98], %169 {strides = array<i32>} : memref<8x128xf32, #tpu.memory_space<vmem>>, vector<8x128xf32>,
    %c0_99 = arith.constant 0 : index
    %172 = arith.index_cast %145 : i32 to index
    %c0_100 = arith.constant 0 : index
    %c0_101 = arith.constant 0 : index
    %173 = vector.load %arg6[%c0_99, %172, %c0_100, %c0_101] : memref<1x4x8x128xf32, #tpu.memory_space<vmem>>, vector<1x1x8x128xf32>
    %174 = vector.shape_cast %173 : vector<1x1x8x128xf32> to vector<8x128xf32>
    %175 = arith.mulf %169, %174 : vector<8x128xf32>
    %176 = arith.index_cast %145 : i32 to index
    %c0_102 = arith.constant 0 : index
    %c0_103 = arith.constant 0 : index
    %177 = vector.load %arg7[%176, %c0_102, %c0_103] : memref<4x8x128xf32, #tpu.memory_space<vmem>>, vector<1x8x128xf32>
    %178 = vector.shape_cast %177 : vector<1x8x128xf32> to vector<8x128xf32>
    %179 = vector.shape_cast %175 : vector<8x128xf32> to vector<1x8x128xf32>
    tpu.vector_store %arg7[%176, %c0_102, %c0_103], %179 {strides = array<i32>} : memref<4x8x128xf32, #tpu.memory_space<vmem>>, vector<1x8x128xf32>,
    %c4_i32 = arith.constant 4 : i32
    return
  }
  func.func @transform_0(%arg0: i32, %arg1: i32) -> (i32, i32, i32) {
    %c1_i32 = arith.constant 1 : i32
    %0 = arith.muli %arg0, %c1_i32 : i32
    %c2_i32 = arith.constant 2 : i32
    %1 = arith.muli %c2_i32, %arg0 : i32
    %c1_i32_0 = arith.constant 1 : i32
    %2 = arith.subi %c1_i32_0, %1 : i32
    %3 = arith.muli %2, %arg1 : i32
    %4 = arith.addi %0, %3 : i32
    %c0_i32 = arith.constant 0 : i32
    %c0_i32_1 = arith.constant 0 : i32
    %c0_i32_2 = arith.constant 0 : i32
    return %4, %c0_i32, %c0_i32_1 : i32, i32, i32
  }
  func.func @transform_1(%arg0: i32, %arg1: i32) -> (i32, i32, i32) {
    %c0_i32 = arith.constant 0 : i32
    %c0_i32_0 = arith.constant 0 : i32
    %c0_i32_1 = arith.constant 0 : i32
    return %arg0, %c0_i32, %c0_i32_0 : i32, i32, i32
  }
  func.func @transform_2(%arg0: i32, %arg1: i32) -> (i32, i32, i32) {
    %c0_i32 = arith.constant 0 : i32
    %c0_i32_0 = arith.constant 0 : i32
    %c0_i32_1 = arith.constant 0 : i32
    return %arg0, %c0_i32, %c0_i32_0 : i32, i32, i32
  }
  func.func @transform_3(%arg0: i32, %arg1: i32) -> (i32, i32, i32) {
    %c0_i32 = arith.constant 0 : i32
    %c0_i32_0 = arith.constant 0 : i32
    %c0_i32_1 = arith.constant 0 : i32
    return %arg0, %c0_i32, %c0_i32_0 : i32, i32, i32
  }
  func.func @transform_4(%arg0: i32, %arg1: i32) -> (i32, i32, i32, i32) {
    %c1_i32 = arith.constant 1 : i32
    %0 = arith.muli %arg0, %c1_i32 : i32
    %c2_i32 = arith.constant 2 : i32
    %1 = arith.muli %c2_i32, %arg0 : i32
    %c1_i32_0 = arith.constant 1 : i32
    %2 = arith.subi %c1_i32_0, %1 : i32
    %3 = arith.muli %2, %arg1 : i32
    %4 = arith.addi %0, %3 : i32
    %c0_i32 = arith.constant 0 : i32
    %c0_i32_1 = arith.constant 0 : i32
    %c0_i32_2 = arith.constant 0 : i32
    return %arg0, %4, %c0_i32, %c0_i32_1 : i32, i32, i32, i32
  }
  func.func @transform_5(%arg0: i32, %arg1: i32) -> (i32, i32, i32) {
    %c1_i32 = arith.constant 1 : i32
    %0 = arith.muli %arg0, %c1_i32 : i32
    %c2_i32 = arith.constant 2 : i32
    %1 = arith.muli %c2_i32, %arg0 : i32
    %c1_i32_0 = arith.constant 1 : i32
    %2 = arith.subi %c1_i32_0, %1 : i32
    %3 = arith.muli %2, %arg1 : i32
    %4 = arith.addi %0, %3 : i32
    %c0_i32 = arith.constant 0 : i32
    %c0_i32_1 = arith.constant 0 : i32
    return %4, %c0_i32, %arg0 : i32, i32, i32
  }
}

</mosaic_0001>

<bundles_post_ra>
// kernel: stage1_forward.1
= control target key start
LH: loop header
LB: loop body
LE: loop exit
PB: predicated region body
PF: predicated region fallthrough
CT: control target
= control target key end

     0   :  { %s3007_s0 = inlined_call_operand.vmem [shape: bf16[8,8,128], index: 0, kind: input, shape index: {}]   ;;  %s3008_s1 = inlined_call_operand.hbm [shape: bf16[2,128,512], index: 1, kind: input, shape index: {}]   ;;  %s3009_s2 = inlined_call_operand.hbm [shape: bf16[2,128,512], index: 2, kind: input, shape index: {}]   ;;  %s3010_s3 = inlined_call_operand.vmem [shape: f32[2,1,512], index: 3, kind: input, shape index: {}]   ;;  %s3011_s4 = inlined_call_operand.vmem [shape: f32[2,8,8,128], index: 4, kind: input, shape index: {}]   ;;  %s3012_s5 = inlined_call_operand.hbm [shape: f32[8,8,256], index: 5, kind: output, shape index: {}]  }
   0x1   :  { %3028 = sst [smem:[#allocation24_spill]] %s3007_s0 }
   0x2   :  { %3029 = sst [smem:[#allocation25_spill]] %s3008_s1 }
   0x3   :  { %3030 = sst [smem:[#allocation26_spill]] %s3009_s2 }
   0x4   :  { %3031 = sst [smem:[#allocation27_spill]] %s3011_s4 }
   0x5   :  { %3032 = sst [smem:[#allocation28_spill]] %s3012_s5 }
   0x6   :  { %10 = vsyncpa [#allocation6], 0 }
   0x7   :  { %12 = vsyncpa [#allocation6 + $0x1], 0 }
   0x8   :  { %13 = vsyncpa [#allocation9], 0 }
   0x9   :  { %15 = vsyncpa [#allocation9 + $0x1], 0 }
   0xa   :  { %16 = vsyncpa [#allocation7], 0 }
   0xb   :  { %18 = vsyncpa [#allocation7 + $0x1], 0  ;;  %s2371_s18 = smov 0   ;;  %s2373_s19 = smov 0  }
   0xc   :  { %s2375_s20 = smov 0   ;;  %s2377_s21 = smov 0  }
   0xd   :  { %s2379_s22 = smov 0   ;;  %s2381_s23 = smov 0  }
   0xe   :  { %s2383_s24 = smov 0   ;;  %s2385_s25 = smov 0  }
   0xf   :  { %s2387_s26 = smov 0   ;;  %s2389_s27 = smov 0  }
  0x10   :  { %s2391_s28 = smov 0  }
  0x11 LB: > { %3033 = sst [smem:[#allocation14_spill]] %s2297_s20  ;;  %s1732_s29 = sadd.s32 4294967295, %s2329_s28   ;;  %s2329_s28 = sphi %s2391_s28, %s24_s28   ;;  %s2325_s27 = sphi %s2389_s27, %s3076_s27   ;;  %s2321_s26 = sphi %s2387_s26, %s3072_s26   ;;  %s2317_s25 = sphi %s2385_s25, %s3071_s25   ;;  %s2313_s24 = sphi %s2383_s24, %s3070_s24   ;;  %s2309_s23 = sphi %s2381_s23, %s3069_s23   ;;  %s2305_s22 = sphi %s2379_s22, %s3068_s22   ;;  %s2301_s21 = sphi %s2377_s21, %s3067_s21   ;;  %s2297_s20 = sphi %s2375_s20, %s3066_s20   ;;  %s2293_s19 = sphi %s2373_s19, %s3075_s19   ;;  %s2289_s18 = sphi %s2371_s18, %s3074_s18  }
  0x12   : > { %3034 = sst [smem:[#allocation15_spill]] %s2305_s22  ;;  %s33_s6 = sadd.s32 1, %s2321_s26 }
  0x13   : > { %3035 = sst [smem:[#allocation16_spill]] %s2309_s23  ;;  %s36_s7 = sadd.s32 1, %s2325_s27 }
  0x14   : > { %3036 = sst [smem:[#allocation17_spill]] %s2321_s26  ;;  %p34_p0 = scmp.ge.s32.totalorder %s33_s6, 2 }
  0x15   : > { %3037 = sst [smem:[#allocation18_spill]] %s2325_s27  ;;  %s77_s8 = sadd.s32 1, %s2309_s23 }
  0x16   : > { %p84_p1 = scmp.ne.s32.totalorder %s2309_s23, %s2305_s22  ;;  %p85_p2 = scmp.eq.s32.totalorder %s2329_s28, 0 }
  0x17   : > { %s3078_s6 = smov (%p34_p0, %s33_s6), 0  ;;  %s3080_s7 = smov (!%p34_p0, %s36_s7), %s2325_s27 }
  0x18   : > { %3038 = sst [smem:[#allocation19_spill]] %s3078_s6  ;;  %p2435_p3 = por %p85_p2, %p84_p1 }
  0x19   : > { %p90_p4 = scmp.ne.s32.totalorder %s2305_s22, %s2301_s21  ;;  %p38_p5 = scmp.ge.s32.totalorder %s3080_s7, 2 }
  0x1a   : > { %p91_p6 = scmp.eq.s32.totalorder %s1732_s29, 0  ;;  %s1738_s10 = sshll.u32 %s2325_s27, 1 }
  0x1b   : > { %s201_s11 = sadd.s32 1, %s2297_s20  ;;  %s3082_s7 = smov (%p38_p5, %s3080_s7), 0 }
  0x1c   : > { %3040 = sst [smem:[#allocation20_spill]] %s3082_s7  ;;  %p2444_p7 = por %p91_p6, %p90_p4 }
  0x1d   : > { %s189_s13 = ssub.s32 1, %s1738_s10  ;;  %s74_s14 = ssub.s32 %s2325_s27, %s3082_s7 }
  0x1e   : > { %s3041_s12 = scalar_select %p2444_p7, 1, 0 }
  0x1f   : > { %s190_s15 = smul.u32 %s2321_s26, %s189_s13  ;;  %p75_p8 = scmp.eq.s32.totalorder %s74_s14, 0 }
  0x20   : > { %s1739_s16 = sshll.u32 %s3082_s7, 1  ;;  %p211_p9 = scmp.ne.s32.totalorder %s2297_s20, %s2293_s19 }
  0x21   : > { %s191_s17 = sadd.s32 %s2325_s27, %s190_s15  ;;  %s193_s21 = ssub.s32 1, %s1739_s16 }
  0x22   : > { %s2454_s30 = scalar_select %p75_p8, %s2309_s23, %s77_s8  }
  0x23   : > { %s194_s5 = smul.u32 %s193_s21, %s3078_s6  ;;  %p212_p10 = scmp.eq.s32.totalorder %s1732_s29, 3 }
  0x24   : > { %3042 = sst [smem:[#allocation21_spill]] %s2454_s30  ;;  %p217_p11 = scmp.ne.s32.totalorder %s2293_s19, %s2289_s18 }
  0x25   : > { %s195_s4 = sadd.s32 %s194_s5, %s3082_s7  ;;  %s3043_s0 = sadd.s32 4294967294, %s2329_s28  }
  0x26   : > { %p218_p12 = scmp.eq.s32.totalorder %s3043_s0, 3  ;;  %s196_s10 = ssub.s32 %s191_s17, %s195_s4 }
  0x27   : > { %p2464_p13 = por %p212_p10, %p211_p9  ;;  %s198_s15 = sor.u32 %s196_s10, %s74_s14 }
  0x28   : > { %p2468_p0 = por %p218_p12, %p217_p11  ;;  %p199_p1 = scmp.eq.s32.totalorder %s198_s15, 0 }
  0x29   : > { %s3044_s13 = scalar_select %p2464_p13, 1, 0 }
  0x2a   : > { %s3045_s8 = scalar_select %p2468_p0, 1, 0 }
  0x2b   : > { %p1884_p2 = scmp.lt.s32.totalorder %s2329_s28, 4  ;;  %s2474_s16 = sand.u32 1, %s2309_s23  }
  0x2c   : > { %3046 = sst [smem:[#allocation22_spill]] %s3045_s8  ;;  %s3014_s0 = sshll.u32 %s2474_s16, 8 }
  0x2d   : > { %s2477_s5 = scalar_select %p199_p1, %s2297_s20, %s201_s11  }
  0x2e   : > { %s3015_s4 = sshll.u32 %s2325_s27, 12  ;;  %s3048_s1 = sld [smem:[#allocation25_spill]] }
  0x2f   : > { %3047 = sst [smem:[#allocation23_spill]] %s2477_s5  ;;  %s259_s21 = scalar_lea.vmem [#allocation5], %s3014_s0 }
  0x30   : > { %s266_s10 = sshll.u32 %s259_s21, 4  ;;  %p2494_p4 = pnand %p1884_p2, %p2435_p3  ;;  %s2490_s10 = int_to_ptr.vmem [resolvable:$true] %s266_s10 }
  0x32   : > { %p2145_p8 = pneg %p2494_p4 }
  0x34   : > { %s2486_s14 = scalar_lea.hbm %s3048_s1, %s3015_s4  ;;  %s2148_s9 = scalar_lea.hbm %s3048_s1, 8192 }
  0x35   : > { %s2143_s29 = scalar_lea.hbm %s2486_s14, 4096  ;;  %p2149_p3 = scmp.lt.u32.totalorder %s2486_s14, %s3048_s1 }
  0x36   : > { %p2144_p6 = scmp.ne.s32.totalorder %s2486_s14, %s2143_s29  ;;  %p2150_p11 = scmp.lt.u32.totalorder %s2148_s9, %s2143_s29 }
  0x37   : > { %p2152_p1 = scmp.lt.u32.totalorder %s2143_s29, %s2486_s14 }
  0x38   : > { %p2146_p9 = pnand %p2145_p8, %p2144_p6  ;;  %p2151_p12 = por %p2150_p11, %p2149_p3 }
  0x3a   : > { %p2147_p10 = pneg %p2146_p9  ;;  %p2153_p2 = por %p2152_p1, %p2151_p12 }
  0x3c   : > { %p2154_p5 = pnand %p2153_p2, %p2147_p10 }
  0x3e   : > { %2157 = shalt.err (!%p2154_p5)
}
  0x3f   : > { %s2158_s15 = scalar_lea.vmem %s2490_s10, 4096  ;;  %s2331_s17 = smov [#allocation5]  }
  0x40   : > { %p2159_p6 = scmp.ne.s32.totalorder %s2490_s10, %s2158_s15  ;;  %s2163_s21 = sshll.u32 %s2331_s17, 4  ;;  %s2164_s21 = int_to_ptr.vmem [resolvable:$false] %s2163_s21 }
  0x41   : > { %s2165_s0 = scalar_lea.vmem %s2164_s21, 8192  ;;  %p2166_p13 = scmp.lt.s32.totalorder %s2490_s10, %s2164_s21 }
  0x42   : > { %p2161_p9 = pnand %p2159_p6, %p2145_p8  ;;  %p2167_p3 = scmp.lt.s32.totalorder %s2165_s0, %s2158_s15 }
  0x44   : > { %p2162_p0 = pneg %p2161_p9  ;;  %p2168_p11 = por %p2167_p3, %p2166_p13 }
  0x46   : > { %p2169_p12 = pnand %p2168_p11, %p2162_p0 }
  0x48   : > { %2172 = shalt.err (!%p2169_p12)
}
  0x49   : > { %s3020_s4 = smov 256   ;;  %s2333_s29 = smov 16  }
  0x4a   : > { %s3050_s15 = scalar_lea.sflag [#allocation6], %s2474_s16  ;;  %p323_p13 = scmp.lt.s32.totalorder %s2329_s28, 5 }
  0x4b   : > { %1876 = dma.hbm_to_vmem [thread:$0]  (!%p2494_p4), %s2486_s14, 4096, %s2490_s10, %s3050_s15, %s3020_s4, %s3020_s4, %s2333_s29  }
  0x4c   : > { %s3051_s9 = sshll.u32 %s2325_s27, 12  ;;  %s3052_s2 = sld [smem:[#allocation26_spill]] }
  0x4d   : > { %p3053_p0 = scmp.ge.s32.totalorder %s2329_s28, 1  ;;  %s3055_s7 = sshll.u32 %s2474_s16, 8 }
  0x4e   : > { %s280_s6 = scalar_lea.vmem [#allocation8], %s3055_s7  ;;  %s277_s14 = scalar_lea.sflag [#allocation9], %s2474_s16 }
  0x4f   : > { %p2540_p5 = pnand %p3053_p0, %p323_p13  ;;  %s287_s26 = sshll.u32 %s280_s6, 4  ;;  %s2546_s26 = int_to_ptr.vmem [resolvable:$true] %s287_s26 }
  0x52   : > { %s2536_s0 = scalar_lea.hbm %s3052_s2, %s3051_s9  ;;  %s2178_s17 = scalar_lea.hbm %s3052_s2, 8192 }
  0x53   : > { %s2173_s10 = scalar_lea.hbm %s2536_s0, 4096  ;;  %p2179_p6 = scmp.lt.u32.totalorder %s2536_s0, %s3052_s2 }
  0x54   : > { %p2174_p10 = scmp.ne.s32.totalorder %s2536_s0, %s2173_s10  ;;  %p2180_p9 = scmp.lt.u32.totalorder %s2178_s17, %s2173_s10 }
  0x55   : > { %p2182_p11 = scmp.lt.u32.totalorder %s2173_s10, %s2536_s0 }
  0x56   : > { %p2176_p1 = pnand %p2174_p10, %p2145_p8  ;;  %p2181_p3 = por %p2180_p9, %p2179_p6 }
  0x58   : > { %p2177_p2 = pneg %p2176_p1  ;;  %p2183_p12 = por %p2182_p11, %p2181_p3 }
  0x5a   : > { %p2184_p13 = pnand %p2183_p12, %p2177_p2 }
  0x5c   : > { %2187 = shalt.err (!%p2184_p13)
}
  0x5d   : > { %s2188_s6 = scalar_lea.vmem %s2546_s26, 4096  ;;  %s2334_s7 = smov [#allocation8]  }
  0x5e   : > { %p2189_p0 = scmp.ne.s32.totalorder %s2546_s26, %s2188_s6  ;;  %s2193_s15 = sshll.u32 %s2334_s7, 4  ;;  %s2194_s15 = int_to_ptr.vmem [resolvable:$false] %s2193_s15 }
  0x5f   : > { %s2195_s4 = scalar_lea.vmem %s2194_s15, 8192  ;;  %p2196_p7 = scmp.lt.s32.totalorder %s2546_s26, %s2194_s15 }
  0x60   : > { %p2191_p10 = pnand %p2189_p0, %p2145_p8  ;;  %p2197_p6 = scmp.lt.s32.totalorder %s2195_s4, %s2188_s6 }
  0x62   : > { %p2192_p1 = pneg %p2191_p10  ;;  %p2198_p9 = por %p2197_p6, %p2196_p7 }
  0x64   : > { %p2199_p3 = pnand %p2198_p9, %p2192_p1 }
  0x66   : > { %2202 = shalt.err (!%p2199_p3)
}
  0x67   : > { %s3056_s10 = smov 256   ;;  %327 = sbr.rel (%p2540_p5) target bundleno = 1250 (0x4e2), region = 40 }
  0x68   : > { %1879 = dma.hbm_to_vmem [thread:$0]  (!%p2494_p4), %s2536_s0, 4096, %s2546_s26, %s277_s14, %s3056_s10, %s3056_s10, %s2333_s29  }
  0x69   : > { %s329_s9 = sand.u32 (!%p2540_p5), 1, %s2305_s22   ;;  %p3057_p7 = scmp.ne.s32.totalorder (!%p2540_p5), %s3041_s12, 0 }
  0x6a   : > { %s1749_s17 = sshll.u32 (!%p2540_p5), %s329_s9, 8  ;;  %s330_s21 = scalar_lea.sflag (!%p2540_p5), [#allocation6], %s329_s9 }
  0x6b   : > { %s2580_s6 = scalar_lea.vmem (!%p2540_p5), [#allocation5], %s1749_s17 }
  0x6e   : > { %2276 = dma.done.wait (%p3057_p7), %s330_s21, 4096  }
  0x6f   : > { %2278 = vsyncadd (%p3057_p7), %s330_s21, 4294963200  ;;  %s339_s16 = scalar_lea.sflag [#allocation9], %s329_s9  ;;  %s2586_s11 = scalar_lea.vmem [#allocation8], %s1749_s17 }
  0x70   : > { %2280 = dma.done.wait (%p3057_p7), %s339_s16, 4096  }
  0x71   : > { %2282 = vsyncadd (%p3057_p7), %s339_s16, 4294963200  ;;  %s3022_s1 = sand.u32 1, %s2293_s19   ;;  %s1752_s26 = sshll.u32 %s2317_s25, 1 }
  0x72   : > { %s1751_s29 = sshll.u32 %s3022_s1, 5  ;;  %s2596_s0 = ssub.s32 1, %s1752_s26 }
  0x73   : > { %s402_s14 = smul.u32 %s2313_s24, %s2596_s0  ;;  %p414_p4 = scmp.lt.s32.totalorder %s2317_s25, 1 }
  0x74   : > { %s3058_s2 = sld [smem:[#allocation24_spill]]  ;;  %s3059_s5 = sld [smem:[#allocation27_spill]] }
  0x75   : > { %s2602_s7 = sadd.s32 %s2317_s25, %s402_s14  ;;  %s2621_s8 = scalar_lea.vmem [#allocation10], %s1751_s29 }
  0x76   : > { %s1753_s12 = sshll.u32 %s2602_s7, 2  ;;  %p1760_p5 = scmp.ne.s32.totalorder %s2313_s24, 0 }
  0x77   : > { %p405_p8 = scmp.lt.s32.totalorder %s1753_s12, 7  ;;  %v2335_v0 = vmov (!%p1760_p5), 0.0  }
  0x78   : > { %s415_s15 = scalar_select %p414_p4, %s2317_s25, 1 }
  0x79   : > { %s3084_s12 = smov (!%p405_p8, %s1753_s12), 7  ;;  %445 = sbr.rel (%p1760_p5) target bundleno = 128 (0x80), region = 52 }
  0x7a   : > { %s1755_s4 = sshll.u32 %s415_s15, 2  ;;  %s1758_s10 = sshll.u32 %s415_s15, 3  ;;  %446 = vst [vmem:[#allocation3] sm:$0xff] (!%p1760_p5), %v2335_v0  ;;  %447 = vst [vmem:[#allocation4] sm:$0xff] (!%p1760_p5), %v2335_v0 }
  0x7b   : > { %s1754_s9 = sshll.u32 %s3084_s12, 2  ;;  %s2609_s16 = scalar_lea.vmem %s3010_s3, %s1755_s4 }
  0x7c   : > { %s2614_s27 = scalar_lea.vmem %s3058_s2, %s1754_s9  ;;  %s428_s14 = sadd.s32 %s1758_s10, %s3084_s12 }
  0x7d   : > { %s1759_s30 = sshll.u32 %s428_s14, 3 }
  0x7e   : > { %s2619_s20 = scalar_lea.vmem %s3059_s5, %s1759_s30 }
  0x80 PF: > { %v1981_v1 = vld [vmem:[%s2580_s6 + $0x4] ss:$16 sps:$4 sm:$0xff]   ;;  %v1983_v2 = vld [vmem:[%s2580_s6 + $0xc] ss:$16 sps:$4 sm:$0xff]   ;;  %v2336_v3 = vmov 0   ;;  %s1862_s2 = smul.u32 96, %s2317_s25 }
  0x81   : > { %710 = vmatprep.mubr.bf16.mxu0 %v2336_v3  ;;  %763 = vmatprep.mubr.bf16.mxu1 %v2336_v3  ;;  %v1985_v4 = vld [vmem:[%s2580_s6] ss:$16 sps:$4 sm:$0xff]   ;;  %v1986_v5 = vld [vmem:[%s2580_s6 + $0x8] ss:$16 sps:$4 sm:$0xff]   ;;  %v1987_v6 = vld [vmem:[%s2580_s6 + $0x24] ss:$16 sps:$4 sm:$0xff]  }
  0x82   : > { %678 = vmatprep.subr.bf16.mxu0 %v1981_v1  ;;  %731 = vmatprep.subr.bf16.mxu1 %v1983_v2  ;;  %v1989_v7 = vld [vmem:[%s2580_s6 + $0x2c] ss:$16 sps:$4 sm:$0xff]   ;;  %v1991_v8 = vld [vmem:[%s2580_s6 + $0x20] ss:$16 sps:$4 sm:$0xff]   ;;  %v1992_v9 = vld [vmem:[%s2580_s6 + $0x28] ss:$16 sps:$4 sm:$0xff]  }
  0x83   : > { %679 = vmatpush1.bf16.msra.mxu0 %v1985_v4  ;;  %732 = vmatpush1.bf16.msra.mxu1 %v1986_v5  ;;  %v1993_v10 = vld [vmem:[%s2580_s6 + $0x44] ss:$16 sps:$4 sm:$0xff]   ;;  %v1995_v11 = vld [vmem:[%s2580_s6 + $0x4c] ss:$16 sps:$4 sm:$0xff]   ;;  %v1997_v12 = vld [vmem:[%s2580_s6 + $0x40] ss:$16 sps:$4 sm:$0xff]  }
  0x84   : > { %680 = vmatprep.subr.bf16.mxu0 %v1987_v6  ;;  %733 = vmatprep.subr.bf16.mxu1 %v1989_v7  ;;  %v1998_v13 = vld [vmem:[%s2580_s6 + $0x48] ss:$16 sps:$4 sm:$0xff]   ;;  %v1999_v14 = vld [vmem:[%s2580_s6 + $0x64] ss:$16 sps:$4 sm:$0xff]   ;;  %v2001_v15 = vld [vmem:[%s2580_s6 + $0x6c] ss:$16 sps:$4 sm:$0xff]   ;;  %v486_v7 = vlaneseq }
  0x85   : > { %v2003_v16 = vld [vmem:[%s2580_s6 + $0x60] ss:$16 sps:$4 sm:$0xff]   ;;  %v2004_v17 = vld [vmem:[%s2580_s6 + $0x68] ss:$16 sps:$4 sm:$0xff]   ;;  %v2005_v18 = vld [vmem:[%s2580_s6 + $0x84] ss:$16 sps:$4 sm:$0xff]  }
  0x86   : > { %v2007_v19 = vld [vmem:[%s2580_s6 + $0x8c] ss:$16 sps:$4 sm:$0xff]   ;;  %v2009_v20 = vld [vmem:[%s2580_s6 + $0x80] ss:$16 sps:$4 sm:$0xff]   ;;  %v2010_v21 = vld [vmem:[%s2580_s6 + $0x88] ss:$16 sps:$4 sm:$0xff]  }
  0x87   : > { %681 = vmatpush1.bf16.msra.mxu0 %v1991_v8  ;;  %734 = vmatpush1.bf16.msra.mxu1 %v1992_v9  ;;  %v2011_v22 = vld [vmem:[%s2580_s6 + $0xa4] ss:$16 sps:$4 sm:$0xff]   ;;  %v2013_v23 = vld [vmem:[%s2580_s6 + $0xac] ss:$16 sps:$4 sm:$0xff]   ;;  %v2015_v24 = vld [vmem:[%s2580_s6 + $0xa0] ss:$16 sps:$4 sm:$0xff]  }
  0x88   : > { %682 = vmatprep.subr.bf16.mxu0 %v1993_v10  ;;  %735 = vmatprep.subr.bf16.mxu1 %v1995_v11  ;;  %v2016_v25 = vld [vmem:[%s2580_s6 + $0xa8] ss:$16 sps:$4 sm:$0xff]   ;;  %v2017_v26 = vld [vmem:[%s2580_s6 + $0xc4] ss:$16 sps:$4 sm:$0xff]   ;;  %v2019_v27 = vld [vmem:[%s2580_s6 + $0xcc] ss:$16 sps:$4 sm:$0xff]  }
  0x89   : > { %v2021_v28 = vld [vmem:[%s2580_s6 + $0xc0] ss:$16 sps:$4 sm:$0xff]   ;;  %v2022_v29 = vld [vmem:[%s2580_s6 + $0xc8] ss:$16 sps:$4 sm:$0xff]   ;;  %v2023_v30 = vld [vmem:[%s2580_s6 + $0xe4] ss:$16 sps:$4 sm:$0xff]  }
  0x8a   : > { %v2025_v31 = vld [vmem:[%s2580_s6 + $0xec] ss:$16 sps:$4 sm:$0xff]   ;;  %v2027_v32 = vld [vmem:[%s2580_s6 + $0xe0] ss:$16 sps:$4 sm:$0xff]   ;;  %v2028_v33 = vld [vmem:[%s2580_s6 + $0xe8] ss:$16 sps:$4 sm:$0xff]  }
  0x8b   : > { %683 = vmatpush1.bf16.msra.mxu0 %v1997_v12  ;;  %736 = vmatpush1.bf16.msra.mxu1 %v1998_v13  ;;  %v2659_v34 = vld [vmem:[%s2586_s11 + $0x4] ss:$16 sps:$4 sm:$0xff]   ;;  %v2662_v35 = vld [vmem:[%s2586_s11 + $0xc] ss:$16 sps:$4 sm:$0xff]   ;;  %v2666_v37 = vld [vmem:[%s2586_s11] ss:$16 sps:$4 sm:$0xff]  }
  0x8c   : > { %684 = vmatprep.subr.bf16.mxu0 %v1999_v14  ;;  %737 = vmatprep.subr.bf16.mxu1 %v2001_v15  ;;  %v2029_v36 = vld [vmem:[%s2614_s27] sm:$0xff]   ;;  %v2669_v38 = vld [vmem:[%s2586_s11 + $0x8] ss:$16 sps:$4 sm:$0xff]   ;;  %v2677_v40 = vld [vmem:[%s2586_s11 + $0x2c] ss:$16 sps:$4 sm:$0xff]   ;;  %v487_v8 = vshrl.u32 %v486_v7, 7 }
  0x8d   : > { %v2674_v39 = vld [vmem:[%s2586_s11 + $0x24] ss:$16 sps:$4 sm:$0xff]   ;;  %v2680_v41 = vld [vmem:[%s2586_s11 + $0x20] ss:$16 sps:$4 sm:$0xff]   ;;  %v2685_v42 = vld [vmem:[%s2586_s11 + $0x28] ss:$16 sps:$4 sm:$0xff]  }
  0x8e   : > { %v2688_v43 = vld [vmem:[%s2586_s11 + $0x44] ss:$16 sps:$4 sm:$0xff]   ;;  %v2693_v44 = vld [vmem:[%s2586_s11 + $0x4c] ss:$16 sps:$4 sm:$0xff]   ;;  %v2699_v46 = vld [vmem:[%s2586_s11 + $0x40] ss:$16 sps:$4 sm:$0xff]  }
  0x8f   : > { %685 = vmatpush1.bf16.msra.mxu0 %v2003_v16  ;;  %738 = vmatpush1.bf16.msra.mxu1 %v2004_v17  ;;  %v2042_v45 = vld [vmem:[%s2614_s27 + $0x8] sm:$0xff]   ;;  %v2709_v48 = vld [vmem:[%s2586_s11 + $0x64] ss:$16 sps:$4 sm:$0xff]   ;;  %v2717_v50 = vld [vmem:[%s2586_s11 + $0x60] ss:$16 sps:$4 sm:$0xff]   ;;  %v488_v9 = vsub.s32 0, %v487_v8 }
  0x90   : > { %686 = vmatprep.subr.bf16.mxu0 %v2005_v18  ;;  %739 = vmatprep.subr.bf16.mxu1 %v2007_v19  ;;  %v2704_v47 = vld [vmem:[%s2586_s11 + $0x48] ss:$16 sps:$4 sm:$0xff]   ;;  %v2712_v49 = vld [vmem:[%s2586_s11 + $0x6c] ss:$16 sps:$4 sm:$0xff]   ;;  %v2725_v52 = vld [vmem:[%s2586_s11 + $0x84] ss:$16 sps:$4 sm:$0xff]  }
  0x91   : > { %v2720_v51 = vld [vmem:[%s2586_s11 + $0x68] ss:$16 sps:$4 sm:$0xff]   ;;  %v2728_v53 = vld [vmem:[%s2586_s11 + $0x8c] ss:$16 sps:$4 sm:$0xff]   ;;  %v2735_v54 = vld [vmem:[%s2586_s11 + $0x80] ss:$16 sps:$4 sm:$0xff]  }
  0x92   : > { %v2738_v55 = vld [vmem:[%s2586_s11 + $0x88] ss:$16 sps:$4 sm:$0xff]   ;;  %v2743_v56 = vld [vmem:[%s2586_s11 + $0xa4] ss:$16 sps:$4 sm:$0xff]   ;;  %v2746_v57 = vld [vmem:[%s2586_s11 + $0xac] ss:$16 sps:$4 sm:$0xff]  }
  0x93   : > { %687 = vmatpush1.bf16.msra.mxu0 %v2009_v20  ;;  %740 = vmatpush1.bf16.msra.mxu1 %v2010_v21  ;;  %v2751_v58 = vld [vmem:[%s2586_s11 + $0xa0] ss:$16 sps:$4 sm:$0xff]   ;;  %v2754_v59 = vld [vmem:[%s2586_s11 + $0xa8] ss:$16 sps:$4 sm:$0xff]   ;;  %v2759_v60 = vld [vmem:[%s2586_s11 + $0xc4] ss:$16 sps:$4 sm:$0xff]  }
  0x94   : > { %688 = vmatprep.subr.bf16.mxu0 %v2011_v22  ;;  %741 = vmatprep.subr.bf16.mxu1 %v2013_v23  ;;  %v2762_v61 = vld [vmem:[%s2586_s11 + $0xcc] ss:$16 sps:$4 sm:$0xff]   ;;  %v2767_v62 = vld [vmem:[%s2586_s11 + $0xc0] ss:$16 sps:$4 sm:$0xff]   ;;  %v2770_v63 = vld [vmem:[%s2586_s11 + $0xc8] ss:$16 sps:$4 sm:$0xff]  }
  0x95   : > { %v2775_v0 = vld [vmem:[%s2586_s11 + $0xe4] ss:$16 sps:$4 sm:$0xff]   ;;  %v2778_v1 = vld [vmem:[%s2586_s11 + $0xec] ss:$16 sps:$4 sm:$0xff]   ;;  %v2783_v2 = vld [vmem:[%s2586_s11 + $0xe0] ss:$16 sps:$4 sm:$0xff]  }
  0x96   : > { %v2786_v4 = vld [vmem:[%s2586_s11 + $0xe8] ss:$16 sps:$4 sm:$0xff]   ;;  %v840_v5 = vld [vmem:[#allocation3] sm:$0xff]  ;;  %v496_v10 = vsub.s32 2, %v487_v8  ;;  %v492_v12 = vsub.s32 1, %v487_v8  ;;  %v500_v13 = vsub.s32 3, %v487_v8 }
  0x97   : > { %689 = vmatpush1.bf16.msra.mxu0 %v2015_v24  ;;  %742 = vmatpush1.bf16.msra.mxu1 %v2016_v25  ;;  %v841_v6 = vpack.c.bf16 %v840_v5, %v840_v5  ;;  %v484_v11 = vld [vmem:[%s2609_s16] sm:$0xf]  ;;  %s835_s22 = scalar_lea.vmem [#allocation2], %s1862_s2  ;;  %s1832_s23 = smul.u32 24, %s2317_s25 }
  0x98   : > { %690 = vmatprep.subr.bf16.mxu0 %v2017_v26  ;;  %743 = vmatprep.subr.bf16.mxu1 %v2019_v27  ;;  %v489_v14 = vrot.slane %v484_v11, %v488_v9  ;;  %v497_v15 = vrot.slane %v484_v11, %v496_v10  ;;  %v493_v16 = vrot.slane %v484_v11, %v492_v12  ;;  %s2871_s30 = smul.u32 3, %s2317_s25  ;;  %s1840_s15 = sshll.u32 %s2596_s0, 1 }
  0x99   : > { %v501_v17 = vrot.slane %v484_v11, %v500_v13  ;;  %s1116_s24 = scalar_lea.vmem %s2619_s20, %s1832_s23  ;;  %s1119_s27 = scalar_lea.vmem %s2621_s8, %s1832_s23 [#allocation10] }
  0x9a   : > { %s2875_s5 = sadd.s32 %s2871_s30, %s2596_s0  ;;  %s2919_s4 = sadd.s32 %s1840_s15, %s2871_s30 }
  0x9b   : > { %691 = vmatpush1.bf16.msra.mxu0 %v2021_v28  ;;  %744 = vmatpush1.bf16.msra.mxu1 %v2022_v29  ;;  %s1863_s6 = sshll.u32 %s2875_s5, 5  ;;  %s1839_s1 = sshll.u32 %s2875_s5, 3 }
  0x9c   : > { %692 = vmatprep.subr.bf16.mxu0 %v2023_v30  ;;  %745 = vmatprep.subr.bf16.mxu1 %v2025_v31  ;;  %s1126_s11 = scalar_lea.vmem [#allocation2], %s1863_s6  ;;  %s1247_s29 = scalar_lea.vmem %s2619_s20, %s1839_s1 }
  0x9d   : > { %s1250_s12 = scalar_lea.vmem %s2621_s8, %s1839_s1 [#allocation10]  ;;  %s1864_s10 = sshll.u32 %s2919_s4, 5 }
  0x9e   : > { %s1256_s9 = scalar_lea.vmem [#allocation2], %s1864_s10  ;;  %s1846_s17 = sshll.u32 %s2919_s4, 3 }
  0x9f   : > { %693 = vmatpush1.bf16.msra.mxu0 %v2027_v32  ;;  %746 = vmatpush1.bf16.msra.mxu1 %v2028_v33  ;;  %s1377_s21 = scalar_lea.vmem %s2619_s20, %s1846_s17  ;;  %s1380_s16 = scalar_lea.vmem %s2621_s8, %s1846_s17 [#allocation10] }
  0xa0   : > { %1002 = vmatprep.subr.bf16.mxu0 %v2659_v34  ;;  %1043 = vmatprep.subr.bf16.mxu1 %v2662_v35  ;;  %s1382_s26 = smul.u32 3, %s2596_s0  ;;  %s1866_s0 = sshll.u32 %s2602_s7, 3 }
  0xa1   : > { %s1532_s5 = sshll.u32 %s2621_s8, 4  ;;  %p3062_p11 = scmp.ne.s32.totalorder %s3044_s13, 0  ;;  %s2942_s5 = int_to_ptr.vmem [resolvable:$true] %s1532_s5 }
  0xa2   : > { %711 = vmatmul.mubr.bf16.vlgmr.msra.gmra.mrb[0].mxu0 %v2029_v36  ;;  %764 = vmatmul.mubr.bf16.vlgmr.msra.gmra.mrb[0].mxu1 %v2029_v36  ;;  %s2928_s14 = sadd.s32 %s1382_s26, %s2871_s30  ;;  %s2203_s7 = scalar_lea.vmem %s2942_s5, 512 }
  0xa3   : > { %1003 = vmatpush1.bf16.msra.mxu0 %v2666_v37  ;;  %1044 = vmatpush1.bf16.msra.mxu1 %v2669_v38  ;;  %s1865_s2 = sshll.u32 %s2928_s14, 5  ;;  %s1852_s23 = sshll.u32 %s2928_s14, 3 }
  0xa4   : > { %1004 = vmatprep.subr.bf16.mxu0 %v2674_v39  ;;  %1045 = vmatprep.subr.bf16.mxu1 %v2677_v40  ;;  %s1510_s6 = scalar_lea.vmem %s2621_s8, %s1852_s23 [#allocation10]  ;;  %p2204_p2 = scmp.ne.s32.totalorder %s2942_s5, %s2203_s7 }
  0xa5   : > { %720 = vmatprep.mubr.bf16.mxu0 %v2336_v3  ;;  %773 = vmatprep.mubr.bf16.mxu1 %v2336_v3  ;;  %s2337_s8 = smov [#allocation10]  }
  0xa6   : > { %p2205_p12 = pnand %p2204_p2, %p3062_p11  ;;  %s2207_s15 = sshll.u32 %s2337_s8, 4  ;;  %s2208_s15 = int_to_ptr.vmem [resolvable:$false] %s2207_s15 }
  0xa7   : > { %1005 = vmatpush1.bf16.msra.mxu0 %v2680_v41  ;;  %1046 = vmatpush1.bf16.msra.mxu1 %v2685_v42  ;;  %s2209_s4 = scalar_lea.vmem %s2208_s15, 1024  ;;  %p2210_p0 = scmp.lt.s32.totalorder %s2942_s5, %s2208_s15 }
  0xa8   : > { %1006 = vmatprep.subr.bf16.mxu0 %v2688_v43  ;;  %1047 = vmatprep.subr.bf16.mxu1 %v2693_v44  ;;  %p2206_p13 = pneg %p2205_p12  ;;  %p2211_p10 = scmp.lt.s32.totalorder %s2209_s4, %s2203_s7 }
  0xaa   : > { %721 = vmatmul.mubr.bf16.gmra.mrb[4].mxu0 %v2042_v45  ;;  %774 = vmatmul.mubr.bf16.gmra.mrb[4].mxu1 %v2042_v45  ;;  %p2212_p1 = por %p2211_p10, %p2210_p0 }
  0xab   : > { %1007 = vmatpush1.bf16.msra.mxu0 %v2699_v46  ;;  %1048 = vmatpush1.bf16.msra.mxu1 %v2704_v47 }
  0xac   : > { %1008 = vmatprep.subr.bf16.mxu0 %v2709_v48  ;;  %1049 = vmatprep.subr.bf16.mxu1 %v2712_v49  ;;  %p2213_p6 = pnand %p2212_p1, %p2206_p13 }
  0xad   : > { %1034 = vmatprep.mubr.bf16.mxu0 %v2336_v3  ;;  %1075 = vmatprep.mubr.bf16.mxu1 %v2336_v3 }
  0xaf   : > { %1009 = vmatpush1.bf16.msra.mxu0 %v2717_v50  ;;  %1050 = vmatpush1.bf16.msra.mxu1 %v2720_v51 }
  0xb0   : > { %1010 = vmatprep.subr.bf16.mxu0 %v2725_v52  ;;  %1051 = vmatprep.subr.bf16.mxu1 %v2728_v53 }
  0xb3   : > { %1011 = vmatpush1.bf16.msra.mxu0 %v2735_v54  ;;  %1052 = vmatpush1.bf16.msra.mxu1 %v2738_v55 }
  0xb4   : > { %1012 = vmatprep.subr.bf16.mxu0 %v2743_v56  ;;  %1053 = vmatprep.subr.bf16.mxu1 %v2746_v57 }
  0xb7   : > { %1013 = vmatpush1.bf16.msra.mxu0 %v2751_v58  ;;  %1054 = vmatpush1.bf16.msra.mxu1 %v2754_v59 }
  0xb8   : > { %1014 = vmatprep.subr.bf16.mxu0 %v2759_v60  ;;  %1055 = vmatprep.subr.bf16.mxu1 %v2762_v61 }
  0xbb   : > { %1015 = vmatpush1.bf16.msra.mxu0 %v2767_v62  ;;  %1056 = vmatpush1.bf16.msra.mxu1 %v2770_v63 }
  0xbc   : > { %1016 = vmatprep.subr.bf16.mxu0 %v2775_v0  ;;  %1057 = vmatprep.subr.bf16.mxu1 %v2778_v1 }
  0xbf   : > { %1017 = vmatpush1.bf16.msra.mxu0 %v2783_v2  ;;  %1058 = vmatpush1.bf16.msra.mxu1 %v2786_v4 }
  0xc0   : > { %1133 = vmatprep.subr.bf16.mxu0 %v2659_v34  ;;  %1174 = vmatprep.subr.bf16.mxu1 %v2662_v35 }
  0xc2   : > { %1035 = vmatmul.mubr.bf16.vlgmr.msra.gmra.mrb[8].mxu0 %v841_v6  ;;  %1076 = vmatmul.mubr.bf16.vlgmr.msra.gmra.mrb[8].mxu1 %v841_v6 }
  0xc3   : > { %1134 = vmatpush1.bf16.msra.mxu0 %v2666_v37  ;;  %1175 = vmatpush1.bf16.msra.mxu1 %v2669_v38 }
  0xc4   : > { %1135 = vmatprep.subr.bf16.mxu0 %v2674_v39  ;;  %1176 = vmatprep.subr.bf16.mxu1 %v2677_v40 }
  0xc5   : > { %1165 = vmatprep.mubr.bf16.mxu0 %v2336_v3  ;;  %1206 = vmatprep.mubr.bf16.mxu1 %v2336_v3 }
  0xc7   : > { %1136 = vmatpush1.bf16.msra.mxu0 %v2680_v41  ;;  %1177 = vmatpush1.bf16.msra.mxu1 %v2685_v42 }
  0xc8   : > { %1137 = vmatprep.subr.bf16.mxu0 %v2688_v43  ;;  %1178 = vmatprep.subr.bf16.mxu1 %v2693_v44 }
  0xcb   : > { %1138 = vmatpush1.bf16.msra.mxu0 %v2699_v46  ;;  %1179 = vmatpush1.bf16.msra.mxu1 %v2704_v47 }
  0xcc   : > { %1139 = vmatprep.subr.bf16.mxu0 %v2709_v48  ;;  %1180 = vmatprep.subr.bf16.mxu1 %v2712_v49 }
  0xcf   : > { %1140 = vmatpush1.bf16.msra.mxu0 %v2717_v50  ;;  %1181 = vmatpush1.bf16.msra.mxu1 %v2720_v51 }
  0xd0   : > { %1141 = vmatprep.subr.bf16.mxu0 %v2725_v52  ;;  %1182 = vmatprep.subr.bf16.mxu1 %v2728_v53 }
  0xd3   : > { %1142 = vmatpush1.bf16.msra.mxu0 %v2735_v54  ;;  %1183 = vmatpush1.bf16.msra.mxu1 %v2738_v55 }
  0xd4   : > { %1143 = vmatprep.subr.bf16.mxu0 %v2743_v56  ;;  %1184 = vmatprep.subr.bf16.mxu1 %v2746_v57 }
  0xd7   : > { %1144 = vmatpush1.bf16.msra.mxu0 %v2751_v58  ;;  %1185 = vmatpush1.bf16.msra.mxu1 %v2754_v59 }
  0xd8   : > { %1145 = vmatprep.subr.bf16.mxu0 %v2759_v60  ;;  %1186 = vmatprep.subr.bf16.mxu1 %v2762_v61 }
  0xdb   : > { %1146 = vmatpush1.bf16.msra.mxu0 %v2767_v62  ;;  %1187 = vmatpush1.bf16.msra.mxu1 %v2770_v63 }
  0xdc   : > { %1147 = vmatprep.subr.bf16.mxu0 %v2775_v0  ;;  %1188 = vmatprep.subr.bf16.mxu1 %v2778_v1 }
  0xdf   : > { %1148 = vmatpush1.bf16.msra.mxu0 %v2783_v2  ;;  %1189 = vmatpush1.bf16.msra.mxu1 %v2786_v4 }
  0xe0   : > { %1263 = vmatprep.subr.bf16.mxu0 %v2659_v34  ;;  %1304 = vmatprep.subr.bf16.mxu1 %v2662_v35 }
 0x175   : > { %v712_v18 = vpop.f32.mrb[0].mxu0  ;;  %v765_v19 = vpop.f32.mrb[0].mxu1 }
 0x176   : > { %v713_v20 = vadd.f32 %v712_v18, %v489_v14  ;;  %v714_v21 = vpop.f32.mrb[1].mxu0  ;;  %v766_v22 = vadd.f32 %v765_v19, %v497_v15  ;;  %v767_v23 = vpop.f32.mrb[1].mxu1 }
 0x177   : > { %v715_v24 = vadd.f32 %v714_v21, %v493_v16  ;;  %v716_v25 = vpop.f32.mrb[2].mxu0  ;;  %v768_v26 = vadd.f32 %v767_v23, %v501_v17  ;;  %v769_v27 = vpop.f32.mrb[2].mxu1 }
 0x178   : > { %784 = vst [vmem:[#allocation2] sm:$0xff] %v713_v20  ;;  %v717_v28 = vadd.f32 %v716_v25, %v489_v14  ;;  %v718_v29 = vpop.f32.mrb[3].mxu0  ;;  %786 = vst [vmem:[#allocation2 + $0x10] sm:$0xff] %v766_v22  ;;  %v770_v30 = vadd.f32 %v769_v27, %v497_v15  ;;  %v771_v31 = vpop.f32.mrb[3].mxu1 }
 0x179   : > { %785 = vst [vmem:[#allocation2 + $0x8] sm:$0xff] %v715_v24  ;;  %v719_v32 = vadd.f32 %v718_v29, %v493_v16  ;;  %787 = vst [vmem:[#allocation2 + $0x18] sm:$0xff] %v768_v26  ;;  %v772_v33 = vadd.f32 %v771_v31, %v501_v17 }
 0x17a   : > { %788 = vst [vmem:[#allocation2 + $0x20] sm:$0xff] %v717_v28  ;;  %790 = vst [vmem:[#allocation2 + $0x30] sm:$0xff] %v770_v30 }
 0x17b   : > { %789 = vst [vmem:[#allocation2 + $0x28] sm:$0xff] %v719_v32  ;;  %791 = vst [vmem:[#allocation2 + $0x38] sm:$0xff] %v772_v33 }
 0x17d   : > { %v722_v36 = vpop.f32.mrb[4].mxu0  ;;  %v775_v45 = vpop.f32.mrb[4].mxu1 }
 0x17e   : > { %v723_v5 = vadd.f32 %v722_v36, %v489_v14  ;;  %v776_v6 = vadd.f32 %v775_v45, %v497_v15  ;;  %v724_v7 = vpop.f32.mrb[5].mxu0  ;;  %v777_v8 = vpop.f32.mrb[5].mxu1 }
 0x17f   : > { %v725_v9 = vadd.f32 %v724_v7, %v493_v16  ;;  %v778_v10 = vadd.f32 %v777_v8, %v501_v17  ;;  %v726_v11 = vpop.f32.mrb[6].mxu0  ;;  %v779_v12 = vpop.f32.mrb[6].mxu1 }
 0x180   : > { %792 = vst [vmem:[#allocation2 + $0x40] sm:$0xff] %v723_v5  ;;  %794 = vst [vmem:[#allocation2 + $0x50] sm:$0xff] %v776_v6  ;;  %v727_v13 = vadd.f32 %v726_v11, %v489_v14  ;;  %v780_v18 = vadd.f32 %v779_v12, %v497_v15  ;;  %v728_v19 = vpop.f32.mrb[7].mxu0  ;;  %v781_v20 = vpop.f32.mrb[7].mxu1 }
 0x181   : > { %793 = vst [vmem:[#allocation2 + $0x48] sm:$0xff] %v725_v9  ;;  %795 = vst [vmem:[#allocation2 + $0x58] sm:$0xff] %v778_v10  ;;  %v729_v21 = vadd.f32 %v728_v19, %v493_v16  ;;  %v782_v22 = vadd.f32 %v781_v20, %v501_v17 }
 0x182   : > { %796 = vst [vmem:[#allocation2 + $0x60] sm:$0xff] %v727_v13  ;;  %798 = vst [vmem:[#allocation2 + $0x70] sm:$0xff] %v780_v18  ;;  %v1107_v18 = vld [vmem:[#allocation4] sm:$0xff] }
 0x183   : > { %797 = vst [vmem:[#allocation2 + $0x68] sm:$0xff] %v729_v21  ;;  %799 = vst [vmem:[#allocation2 + $0x78] sm:$0xff] %v782_v22 }
 0x18a   : > { %v836_v23 = vld [vmem:[%s835_s22] sm:$0xff]  ;;  %v837_v27 = vld [vmem:[%s835_s22 + $0x8] sm:$0xff]  ;;  %v838_v33 = vld [vmem:[%s835_s22 + $0x10] sm:$0xff] }
 0x18b   : > { %v839_v45 = vld [vmem:[%s835_s22 + $0x18] sm:$0xff]  ;;  %s1386_s22 = scalar_lea.vmem [#allocation2], %s1865_s2 }
 0x195   : > { %v1036_v24 = vpop.f32.mrb[8].mxu0  ;;  %v1077_v25 = vpop.f32.mrb[8].mxu1 }
 0x196   : > { %v1084_v26 = vadd.f32 %v1036_v24, %v836_v23  ;;  %v1038_v28 = vpop.f32.mrb[9].mxu0  ;;  %v1079_v14 = vpop.f32.mrb[9].mxu1  ;;  %v1086_v36 = vadd.f32 %v1077_v25, %v838_v33 }
 0x197   : > { %v1085_v15 = vadd.f32 %v1038_v28, %v837_v27  ;;  %v1040_v29 = vpop.f32.mrb[10].mxu0  ;;  %v1081_v30 = vpop.f32.mrb[10].mxu1  ;;  %v1087_v5 = vadd.f32 %v1079_v14, %v839_v45 }
 0x198   : > { %v1829_v31 = vmul.f32 -1.442695, %v1084_v26  ;;  %v1041_v32 = vpop.f32.mrb[11].mxu0  ;;  %v1082_v16 = vpop.f32.mrb[11].mxu1  ;;  %v1831_v6 = vmul.f32 -1.442695, %v1086_v36 }
 0x199   : > { %v1830_v17 = vmul.f32 -1.442695, %v1085_v15  ;;  %v1117_v26 = vld [vmem:[%s1116_s24] sm:$0xff]  ;;  %v1128_v32 = vld [vmem:[%s1126_s11 + $0x8] sm:$0xff]  ;;  %s1529_s24 = sadd.s32 %s2317_s25, %s1866_s0 }
 0x19a   : > { %2079 = vpow2.f32 %v1829_v31  ;;  %v1127_v15 = vld [vmem:[%s1126_s11] sm:$0xff]  ;;  %s1857_s30 = sshll.u32 %s1529_s24, 7 }
 0x19b   : > { %2081 = vpow2.f32 %v1830_v17 }
 0x19c   : > { %2083 = vtanh.f32 %v1087_v5 }
 0x19d   : > { %2085 = vpow2.f32 %v1831_v6 }
 0x1a4   : > { %v2080_v7 = vpop.eup %2079 }
 0x1a5   : > { %v1097_v8 = vadd.f32 1.0, %v2080_v7  ;;  %v2082_v9 = vpop.eup %2081  ;;  %v1129_v7 = vld [vmem:[%s1126_s11 + $0x10] sm:$0xff] }
 0x1a6   : > { %v1098_v10 = vadd.f32 1.0, %v2082_v9  ;;  %v2084_v11 = vpop.eup %2083  ;;  %v1130_v9 = vld [vmem:[%s1126_s11 + $0x18] sm:$0xff] }
 0x1a7   : > { %2087 = vrcp.f32 %v1097_v8  ;;  %v2086_v12 = vpop.eup %2085 }
 0x1a8   : > { %2089 = vrcp.f32 %v1098_v10  ;;  %v1099_v21 = vadd.f32 1.0, %v2086_v12 }
 0x1aa   : > { %2091 = vrcp.f32 %v1099_v21 }
 0x1b1   : > { %v2088_v13 = vpop.eup %2087 }
 0x1b2   : > { %v1109_v19 = vmul.f32 %v2088_v13, %v2084_v11  ;;  %v2090_v20 = vpop.eup %2089 }
 0x1b3   : > { %v1108_v22 = vmul.f32 %v2090_v20, %v1107_v18 }
 0x1b4   : > { %v2092_v24 = vpop.eup %2091 }
 0x1b5   : > { %v2830_v23 = vadd.f32 %v1109_v19, %v1108_v22 }
 0x1b7   : > { %2093 = vtanh.f32 %v2830_v23 }
 0x1c1   : > { %v2094_v25 = vpop.eup %2093 }
 0x1c2   : > { %v1112_v27 = vmul.f32 %v2094_v25, %v2092_v24 }
 0x1c4   : > { %v1132_v28 = vpack.c.bf16 %v1112_v27, %v1112_v27  ;;  %v1118_v14 = vmul.f32 %v1117_v26, %v1112_v27 }
 0x1c6   : > { %1166 = vmatmul.mubr.bf16.vlgmr.msra.gmra.mrb[12].mxu0 %v1132_v28  ;;  %1207 = vmatmul.mubr.bf16.vlgmr.msra.gmra.mrb[12].mxu1 %v1132_v28  ;;  %1120 = vst [vmem:[%s1119_s27] sm:$0xff] %v1118_v14  ;;  %s1507_s27 = scalar_lea.vmem %s2619_s20, %s1852_s23  ;;  %s3061_s20 = sand.u32 1, %s2293_s19  }
 0x1c7   : > { %1264 = vmatpush1.bf16.msra.mxu0 %v2666_v37  ;;  %1305 = vmatpush1.bf16.msra.mxu1 %v2669_v38  ;;  %s2946_s25 = scalar_lea.sflag [#allocation7], %s3061_s20 }
 0x1c8   : > { %1265 = vmatprep.subr.bf16.mxu0 %v2674_v39  ;;  %1306 = vmatprep.subr.bf16.mxu1 %v2677_v40 }
 0x1c9   : > { %1295 = vmatprep.mubr.bf16.mxu0 %v2336_v3  ;;  %1336 = vmatprep.mubr.bf16.mxu1 %v2336_v3 }
 0x1cb   : > { %1266 = vmatpush1.bf16.msra.mxu0 %v2680_v41  ;;  %1307 = vmatpush1.bf16.msra.mxu1 %v2685_v42 }
 0x1cc   : > { %1267 = vmatprep.subr.bf16.mxu0 %v2688_v43  ;;  %1308 = vmatprep.subr.bf16.mxu1 %v2693_v44 }
 0x1cf   : > { %1268 = vmatpush1.bf16.msra.mxu0 %v2699_v46  ;;  %1309 = vmatpush1.bf16.msra.mxu1 %v2704_v47 }
 0x1d0   : > { %1269 = vmatprep.subr.bf16.mxu0 %v2709_v48  ;;  %1310 = vmatprep.subr.bf16.mxu1 %v2712_v49 }
 0x1d3   : > { %1270 = vmatpush1.bf16.msra.mxu0 %v2717_v50  ;;  %1311 = vmatpush1.bf16.msra.mxu1 %v2720_v51 }
 0x1d4   : > { %1271 = vmatprep.subr.bf16.mxu0 %v2725_v52  ;;  %1312 = vmatprep.subr.bf16.mxu1 %v2728_v53 }
 0x1d7   : > { %1272 = vmatpush1.bf16.msra.mxu0 %v2735_v54  ;;  %1313 = vmatpush1.bf16.msra.mxu1 %v2738_v55 }
 0x1d8   : > { %1273 = vmatprep.subr.bf16.mxu0 %v2743_v56  ;;  %1314 = vmatprep.subr.bf16.mxu1 %v2746_v57 }
 0x1db   : > { %1274 = vmatpush1.bf16.msra.mxu0 %v2751_v58  ;;  %1315 = vmatpush1.bf16.msra.mxu1 %v2754_v59 }
 0x1dc   : > { %1275 = vmatprep.subr.bf16.mxu0 %v2759_v60  ;;  %1316 = vmatprep.subr.bf16.mxu1 %v2762_v61 }
 0x1df   : > { %1276 = vmatpush1.bf16.msra.mxu0 %v2767_v62  ;;  %1317 = vmatpush1.bf16.msra.mxu1 %v2770_v63 }
 0x1e0   : > { %1277 = vmatprep.subr.bf16.mxu0 %v2775_v0  ;;  %1318 = vmatprep.subr.bf16.mxu1 %v2778_v1 }
 0x1e3   : > { %1278 = vmatpush1.bf16.msra.mxu0 %v2783_v2  ;;  %1319 = vmatpush1.bf16.msra.mxu1 %v2786_v4 }
 0x1e4   : > { %1393 = vmatprep.subr.bf16.mxu0 %v2659_v34  ;;  %1434 = vmatprep.subr.bf16.mxu1 %v2662_v35 }
 0x299   : > { %v1167_v29 = vpop.f32.mrb[12].mxu0  ;;  %v1208_v30 = vpop.f32.mrb[12].mxu1 }
 0x29a   : > { %v1215_v31 = vadd.f32 %v1167_v29, %v1127_v15  ;;  %v1169_v16 = vpop.f32.mrb[13].mxu0  ;;  %v1210_v17 = vpop.f32.mrb[13].mxu1  ;;  %v1217_v8 = vadd.f32 %v1208_v30, %v1129_v7  ;;  %v1248_v29 = vld [vmem:[%s1247_s29] sm:$0xff]  ;;  %s3060_s29 = sld [smem:[#allocation28_spill]] }
 0x29b   : > { %v1216_v33 = vadd.f32 %v1169_v16, %v1128_v32  ;;  %v1171_v36 = vpop.f32.mrb[14].mxu0  ;;  %v1212_v34 = vpop.f32.mrb[14].mxu1  ;;  %v1218_v10 = vadd.f32 %v1210_v17, %v1130_v9  ;;  %v1378_v17 = vld [vmem:[%s1377_s21] sm:$0xff]  ;;  %v1388_v9 = vld [vmem:[%s1386_s22 + $0x8] sm:$0xff] }
 0x29c   : > { %v1836_v45 = vmul.f32 -1.442695, %v1215_v31  ;;  %v1172_v35 = vpop.f32.mrb[15].mxu0  ;;  %v1213_v5 = vpop.f32.mrb[15].mxu1  ;;  %v1838_v11 = vmul.f32 -1.442695, %v1217_v8 }
 0x29d   : > { %v1837_v6 = vmul.f32 -1.442695, %v1216_v33  ;;  %v1389_v5 = vld [vmem:[%s1386_s22 + $0x10] sm:$0xff] }
 0x29e   : > { %2095 = vpow2.f32 %v1836_v45  ;;  %v1387_v45 = vld [vmem:[%s1386_s22] sm:$0xff] }
 0x29f   : > { %2097 = vpow2.f32 %v1837_v6 }
 0x2a0   : > { %2099 = vtanh.f32 %v1218_v10 }
 0x2a1   : > { %2101 = vpow2.f32 %v1838_v11  ;;  %v1390_v11 = vld [vmem:[%s1386_s22 + $0x18] sm:$0xff] }
 0x2a8   : > { %v2096_v12 = vpop.eup %2095 }
 0x2a9   : > { %v1228_v13 = vadd.f32 1.0, %v2096_v12  ;;  %v2098_v18 = vpop.eup %2097 }
 0x2aa   : > { %v1229_v19 = vadd.f32 1.0, %v2098_v18  ;;  %v2100_v20 = vpop.eup %2099 }
 0x2ab   : > { %2103 = vrcp.f32 %v1228_v13  ;;  %v2102_v21 = vpop.eup %2101 }
 0x2ac   : > { %2105 = vrcp.f32 %v1229_v19  ;;  %v1230_v26 = vadd.f32 1.0, %v2102_v21 }
 0x2ae   : > { %2107 = vrcp.f32 %v1230_v26 }
 0x2b5   : > { %v2104_v22 = vpop.eup %2103 }
 0x2b6   : > { %v1240_v24 = vmul.f32 %v2104_v22, %v2100_v20  ;;  %v2106_v25 = vpop.eup %2105 }
 0x2b7   : > { %v1239_v27 = vmul.f32 %v2106_v25, %v2830_v23 }
 0x2b8   : > { %v2108_v14 = vpop.eup %2107 }
 0x2b9   : > { %v2879_v28 = vadd.f32 %v1240_v24, %v1239_v27 }
 0x2bb   : > { %2109 = vtanh.f32 %v2879_v28 }
 0x2c5   : > { %v2110_v15 = vpop.eup %2109 }
 0x2c6   : > { %v1243_v30 = vmul.f32 %v2110_v15, %v2108_v14 }
 0x2c8   : > { %v1262_v31 = vpack.c.bf16 %v1243_v30, %v1243_v30  ;;  %v1249_v32 = vmul.f32 %v1248_v29, %v1243_v30 }
 0x2ca   : > { %1296 = vmatmul.mubr.bf16.vlgmr.msra.gmra.mrb[16].mxu0 %v1262_v31  ;;  %1337 = vmatmul.mubr.bf16.vlgmr.msra.gmra.mrb[16].mxu1 %v1262_v31  ;;  %1251 = vst [vmem:[%s1250_s12] sm:$0xff] %v1249_v32  ;;  %s2940_s12 = scalar_lea.hbm %s3060_s29, %s1857_s30 }
 0x2cb   : > { %1394 = vmatpush1.bf16.msra.mxu0 %v2666_v37  ;;  %1435 = vmatpush1.bf16.msra.mxu1 %v2669_v38  ;;  %v1259_v38 = vld [vmem:[%s1256_s9 + $0x10] sm:$0xff] }
 0x2cc   : > { %1395 = vmatprep.subr.bf16.mxu0 %v2674_v39  ;;  %1436 = vmatprep.subr.bf16.mxu1 %v2677_v40 }
 0x2cd   : > { %1425 = vmatprep.mubr.bf16.mxu0 %v2336_v3  ;;  %1466 = vmatprep.mubr.bf16.mxu1 %v2336_v3  ;;  %v1257_v3 = vld [vmem:[%s1256_s9] sm:$0xff] }
 0x2cf   : > { %1396 = vmatpush1.bf16.msra.mxu0 %v2680_v41  ;;  %1437 = vmatpush1.bf16.msra.mxu1 %v2685_v42  ;;  %v1258_v42 = vld [vmem:[%s1256_s9 + $0x8] sm:$0xff] }
 0x2d0   : > { %1397 = vmatprep.subr.bf16.mxu0 %v2688_v43  ;;  %1438 = vmatprep.subr.bf16.mxu1 %v2693_v44  ;;  %v1260_v44 = vld [vmem:[%s1256_s9 + $0x18] sm:$0xff] }
 0x2d3   : > { %1398 = vmatpush1.bf16.msra.mxu0 %v2699_v46  ;;  %1439 = vmatpush1.bf16.msra.mxu1 %v2704_v47 }
 0x2d4   : > { %1399 = vmatprep.subr.bf16.mxu0 %v2709_v48  ;;  %1440 = vmatprep.subr.bf16.mxu1 %v2712_v49 }
 0x2d7   : > { %1400 = vmatpush1.bf16.msra.mxu0 %v2717_v50  ;;  %1441 = vmatpush1.bf16.msra.mxu1 %v2720_v51 }
 0x2d8   : > { %1401 = vmatprep.subr.bf16.mxu0 %v2725_v52  ;;  %1442 = vmatprep.subr.bf16.mxu1 %v2728_v53 }
 0x2db   : > { %1402 = vmatpush1.bf16.msra.mxu0 %v2735_v54  ;;  %1443 = vmatpush1.bf16.msra.mxu1 %v2738_v55 }
 0x2dc   : > { %1403 = vmatprep.subr.bf16.mxu0 %v2743_v56  ;;  %1444 = vmatprep.subr.bf16.mxu1 %v2746_v57 }
 0x2df   : > { %1404 = vmatpush1.bf16.msra.mxu0 %v2751_v58  ;;  %1445 = vmatpush1.bf16.msra.mxu1 %v2754_v59 }
 0x2e0   : > { %1405 = vmatprep.subr.bf16.mxu0 %v2759_v60  ;;  %1446 = vmatprep.subr.bf16.mxu1 %v2762_v61 }
 0x2e3   : > { %1406 = vmatpush1.bf16.msra.mxu0 %v2767_v62  ;;  %1447 = vmatpush1.bf16.msra.mxu1 %v2770_v63 }
 0x2e4   : > { %1407 = vmatprep.subr.bf16.mxu0 %v2775_v0  ;;  %1448 = vmatprep.subr.bf16.mxu1 %v2778_v1 }
 0x2e7   : > { %1408 = vmatpush1.bf16.msra.mxu0 %v2783_v2  ;;  %1449 = vmatpush1.bf16.msra.mxu1 %v2786_v4 }
 0x39d   : > { %v1297_v37 = vpop.f32.mrb[16].mxu0  ;;  %v1338_v39 = vpop.f32.mrb[16].mxu1 }
 0x39e   : > { %v1345_v40 = vadd.f32 %v1297_v37, %v1257_v3  ;;  %v1347_v41 = vadd.f32 %v1338_v39, %v1259_v38  ;;  %v1299_v43 = vpop.f32.mrb[17].mxu0  ;;  %v1340_v46 = vpop.f32.mrb[17].mxu1 }
 0x39f   : > { %v1346_v47 = vadd.f32 %v1299_v43, %v1258_v42  ;;  %v1348_v48 = vadd.f32 %v1340_v46, %v1260_v44  ;;  %v1301_v49 = vpop.f32.mrb[18].mxu0  ;;  %v1342_v50 = vpop.f32.mrb[18].mxu1  ;;  %v1508_v42 = vld [vmem:[%s1507_s27] sm:$0xff] }
 0x3a0   : > { %v1843_v51 = vmul.f32 -1.442695, %v1345_v40  ;;  %v1302_v52 = vpop.f32.mrb[19].mxu0  ;;  %v1343_v53 = vpop.f32.mrb[19].mxu1  ;;  %v1845_v55 = vmul.f32 -1.442695, %v1347_v41 }
 0x3a1   : > { %v1844_v54 = vmul.f32 -1.442695, %v1346_v47 }
 0x3a2   : > { %2111 = vpow2.f32 %v1843_v51 }
 0x3a3   : > { %2113 = vpow2.f32 %v1844_v54 }
 0x3a4   : > { %2115 = vtanh.f32 %v1348_v48 }
 0x3a5   : > { %2117 = vpow2.f32 %v1845_v55 }
 0x3ac   : > { %v2112_v56 = vpop.eup %2111 }
 0x3ad   : > { %v1358_v57 = vadd.f32 1.0, %v2112_v56  ;;  %v2114_v58 = vpop.eup %2113 }
 0x3ae   : > { %v1359_v59 = vadd.f32 1.0, %v2114_v58  ;;  %v2116_v60 = vpop.eup %2115 }
 0x3af   : > { %2119 = vrcp.f32 %v1358_v57  ;;  %v2118_v61 = vpop.eup %2117 }
 0x3b0   : > { %2121 = vrcp.f32 %v1359_v59  ;;  %v1360_v1 = vadd.f32 1.0, %v2118_v61 }
 0x3b2   : > { %2123 = vrcp.f32 %v1360_v1 }
 0x3b9   : > { %v2120_v62 = vpop.eup %2119 }
 0x3ba   : > { %v1370_v63 = vmul.f32 %v2120_v62, %v2116_v60  ;;  %v2122_v0 = vpop.eup %2121 }
 0x3bb   : > { %v1369_v2 = vmul.f32 %v2122_v0, %v2879_v28 }
 0x3bc   : > { %v2124_v23 = vpop.eup %2123 }
 0x3bd   : > { %v1371_v4 = vadd.f32 %v1370_v63, %v1369_v2 }
 0x3bf   : > { %2125 = vtanh.f32 %v1371_v4 }
 0x3c9   : > { %v2126_v16 = vpop.eup %2125 }
 0x3ca   : > { %v1373_v33 = vmul.f32 %v2126_v16, %v2124_v23 }
 0x3cc   : > { %v1379_v36 = vmul.f32 %v1378_v17, %v1373_v33  ;;  %v1392_v34 = vpack.c.bf16 %v1373_v33, %v1373_v33 }
 0x3ce   : > { %1426 = vmatmul.mubr.bf16.vlgmr.msra.gmra.mrb[20].mxu0 %v1392_v34  ;;  %1467 = vmatmul.mubr.bf16.vlgmr.msra.gmra.mrb[20].mxu1 %v1392_v34  ;;  %1381 = vst [vmem:[%s1380_s16] sm:$0xff] %v1379_v36 }
 0x4a1   : > { %v1427_v35 = vpop.f32.mrb[20].mxu0  ;;  %v1468_v6 = vpop.f32.mrb[20].mxu1 }
 0x4a2   : > { %v1475_v7 = vadd.f32 %v1427_v35, %v1387_v45  ;;  %v1477_v8 = vadd.f32 %v1468_v6, %v1389_v5  ;;  %v1429_v10 = vpop.f32.mrb[21].mxu0  ;;  %v1470_v12 = vpop.f32.mrb[21].mxu1 }
 0x4a3   : > { %v1476_v13 = vadd.f32 %v1429_v10, %v1388_v9  ;;  %v1478_v18 = vadd.f32 %v1470_v12, %v1390_v11  ;;  %v1431_v19 = vpop.f32.mrb[22].mxu0  ;;  %v1472_v20 = vpop.f32.mrb[22].mxu1 }
 0x4a4   : > { %v1849_v21 = vmul.f32 -1.442695, %v1475_v7  ;;  %v1432_v22 = vpop.f32.mrb[23].mxu0  ;;  %v1473_v24 = vpop.f32.mrb[23].mxu1  ;;  %v1851_v26 = vmul.f32 -1.442695, %v1477_v8 }
 0x4a5   : > { %v1850_v25 = vmul.f32 -1.442695, %v1476_v13 }
 0x4a6   : > { %2127 = vpow2.f32 %v1849_v21 }
 0x4a7   : > { %2129 = vpow2.f32 %v1850_v25 }
 0x4a8   : > { %2131 = vtanh.f32 %v1478_v18 }
 0x4a9   : > { %2133 = vpow2.f32 %v1851_v26 }
 0x4b0   : > { %v2128_v27 = vpop.eup %2127 }
 0x4b1   : > { %v1488_v28 = vadd.f32 1.0, %v2128_v27  ;;  %v2130_v14 = vpop.eup %2129 }
 0x4b2   : > { %v1489_v15 = vadd.f32 1.0, %v2130_v14  ;;  %v2132_v29 = vpop.eup %2131 }
 0x4b3   : > { %2135 = vrcp.f32 %v1488_v28  ;;  %v2134_v30 = vpop.eup %2133 }
 0x4b4   : > { %2137 = vrcp.f32 %v1489_v15  ;;  %v1490_v37 = vadd.f32 1.0, %v2134_v30 }
 0x4b6   : > { %2139 = vrcp.f32 %v1490_v37 }
 0x4bd   : > { %v2136_v31 = vpop.eup %2135 }
 0x4be   : > { %v1500_v32 = vmul.f32 %v2136_v31, %v2132_v29  ;;  %v2138_v3 = vpop.eup %2137 }
 0x4bf   : > { %v1499_v38 = vmul.f32 %v2138_v3, %v1371_v4 }
 0x4c0   : > { %v2140_v40 = vpop.eup %2139 }
 0x4c1   : > { %v1501_v39 = vadd.f32 %v1500_v32, %v1499_v38 }
 0x4c3   : > { %2141 = vtanh.f32 %v1501_v39  ;;  %1504 = vst [vmem:[#allocation4] sm:$0xff] %v1501_v39 }
 0x4cd   : > { %v2142_v41 = vpop.eup %2141 }
 0x4ce   : > { %v1503_v43 = vmul.f32 %v2142_v41, %v2140_v40 }
 0x4d0   : > { %1505 = vst [vmem:[#allocation3] sm:$0xff] %v1503_v43  ;;  %v1509_v44 = vmul.f32 %v1508_v42, %v1503_v43 }
 0x4d2   : > { %1511 = vst [vmem:[%s1510_s6] sm:$0xff] %v1509_v44 }
 0x4d3   : > { %2216 = shalt.err (!%p2213_p6)
}
 0x4d4   : > { %s2217_s10 = scalar_lea.hbm %s2940_s12, 512  ;;  %s2221_s21 = scalar_lea.hbm %s3060_s29, 2048 }
 0x4d5   : > { %p2218_p9 = scmp.ne.s32.totalorder %s2940_s12, %s2217_s10  ;;  %p2222_p4 = scmp.lt.u32.totalorder %s2940_s12, %s3060_s29 }
 0x4d6   : > { %p2223_p8 = scmp.lt.u32.totalorder %s2221_s21, %s2217_s10  ;;  %p2225_p2 = scmp.lt.u32.totalorder %s2217_s10, %s2940_s12 }
 0x4d7   : > { %p2219_p3 = pnand %p2218_p9, %p3062_p11 }
 0x4d8   : > { %p2224_p5 = por %p2223_p8, %p2222_p4 }
 0x4d9   : > { %p2220_p7 = pneg %p2219_p3 }
 0x4da   : > { %p2226_p12 = por %p2225_p2, %p2224_p5 }
 0x4dc   : > { %p2227_p13 = pnand %p2226_p12, %p2220_p7 }
 0x4de   : > { %2230 = shalt.err (!%p2227_p13)
}
 0x4df   : > { %s2338_s14 = smov 128   ;;  %s2339_s2 = smov 256  }
 0x4e0   : > { %s2340_s22 = smov 8  }
 0x4e1   : > { %1871 = dma.vmem_to_hbm [thread:$0]  (%p3062_p11), %s2942_s5, 512, %s2940_s12, %s2946_s25, %s2338_s14, %s2339_s2, %s2340_s22  }
 0x4e2 PF: > { %s3063_s0 = sld [smem:[#allocation22_spill]]  ;;  %p1885_p0 = scmp.ge.s32.totalorder %s2329_s28, 2 }
 0x4e3   : > { %s1547_s23 = sand.u32 1, %s2289_s18  }
 0x4e4   : > { %s1548_s24 = scalar_lea.sflag [#allocation7], %s1547_s23 }
 0x4e8   : > { %p3064_p10 = scmp.ne.s32.totalorder %s3063_s0, 0 }
 0x4ea   : > { %p1881_p1 = pnand %p1885_p0, %p3064_p10 }
 0x4ec   : > { %2284 = dma.done.wait (!%p1881_p1), %s1548_s24, 512  }
 0x4ed   : > { %2286 = vsyncadd (!%p1881_p1), %s1548_s24, 4294966784  ;;  %s24_s28 = sadd.s32 1, %s2329_s28   ;;  %s3065_s27 = sld [smem:[#allocation14_spill]] }
 0x4ee   : > { %p21_p6 = scmp.ge.s32.totalorder %s24_s28, 6   ;;  %s3066_s20 = sld [smem:[#allocation23_spill]] }
 0x4ef   : > { %s3067_s21 = sld [smem:[#allocation15_spill]]  ;;  %s3068_s22 = sld [smem:[#allocation16_spill]] }
 0x4f0   : > { %s3069_s23 = sld [smem:[#allocation21_spill]]  ;;  %s3070_s24 = sld [smem:[#allocation17_spill]] }
 0x4f1   : > { %s3071_s25 = sld [smem:[#allocation18_spill]]  ;;  %s3072_s26 = sld [smem:[#allocation19_spill]] }
 0x4f2   : > { %s3073_s13 = sld [smem:[#allocation20_spill]]  ;;  %s3074_s18 = smov %s2293_s19 }
 0x4f3   : > { %s3075_s19 = smov %s3065_s27  ;;  %23 = sbr.rel (!%p21_p6) target bundleno = 17 (0x11), region = 123 }
 0x4f8   : > { %s3076_s27 = smov %s3073_s13 }
 0x4fa   :  { %1553 = vsyncpa [#allocation6], 1 }
 0x4fb   :  { %1555 = vsyncpa [#allocation6 + $0x1], 1 }
 0x4fc   :  { %1556 = vsyncpa [#allocation9], 1 }
 0x4fd   :  { %1558 = vsyncpa [#allocation9 + $0x1], 1 }
 0x4fe   :  { %1559 = vsyncpa [#allocation7], 1 }
 0x4ff   :  { %1561 = vsyncpa [#allocation7 + $0x1], 1 }

</bundles_post_ra>
